<compile_context>
chip_gen: v7x
topology: tpu7x:2x2x1
jax: 0.10.0
libtpu: 0.0.40
codegen_flags: <defaults>
</compile_context>

<pallas_src>
import jax
import jax.numpy as jnp
from jax import lax
from jax.experimental import pallas as pl
from jax.experimental.pallas import tpu as pltpu

# ----------------------------- hyperparameters ------------------------------
B = 2                     # batch
SEQ = 128                 # time length (rows for mode 1)
D_MODEL = 128             # feature dim, mode 1 (lane-dense: multiple of 128)
FEATURE_MAX_LEN = 128     # feature dim, mode 2 (lane-dense: multiple of 128)
D_FF = 256
EPS = 1e-5                # nn.LayerNorm default


# ------------------------------- Pallas kernel -------------------------------
def poswise_ffn_kernel(x_ref, w1_ref, w2_ref, out_ref):
    """Fused Linear -> ReLU -> Linear -> +residual -> LayerNorm.

    x_ref:  [M, F]    f32   (batch * seq folded into the MXU M dimension)
    w1_ref: [F, D_FF] bf16  (== fc[0].weight.T, bias=False)
    w2_ref: [D_FF, F] bf16  (== fc[2].weight.T, bias=False)
    LayerNorm: PyTorch default (gamma=1, beta=0, eps=1e-5), per-row over F.
    """
    x = x_ref[...]                                   # f32, kept for residual
    x_bf = x.astype(jnp.bfloat16)                    # bf16 MXU operand
    h = jnp.maximum(
        jnp.dot(x_bf, w1_ref[...], preferred_element_type=jnp.float32), 0.0)
    o = jnp.dot(h.astype(jnp.bfloat16), w2_ref[...],
                preferred_element_type=jnp.float32)
    y = o + x                                        # residual add, f32

    # Single-pass LayerNorm statistics (biased variance, matches PyTorch).
    inv_f = 1.0 / y.shape[-1]
    s = jnp.sum(y, axis=-1, keepdims=True)
    sq = jnp.sum(y * y, axis=-1, keepdims=True)
    mu = s * inv_f
    var = sq * inv_f - mu * mu
    out_ref[...] = ((y - mu) * lax.rsqrt(var + EPS)).astype(out_ref.dtype)


# ------------------------------ Python wrapper -------------------------------
def poswise_feed_forward(x, w1_bf16, w2_bf16):
    """x: [B, L, F] f32; w1: [F, d_ff] bf16; w2: [d_ff, F] bf16 -> [B, L, F] f32."""
    bsz, L, F = x.shape
    x2d = x.reshape(bsz * L, F)          # fold batch into the matmul M dim
    # Single fused, gridless call: all operands (<0.5 MiB) resident in VMEM,
    # nothing to tile or pipeline at this size; single TensorCore on v7x.
    out2d = pl.pallas_call(
        poswise_ffn_kernel,
        out_shape=jax.ShapeDtypeStruct((bsz * L, F), jnp.float32),
        in_specs=[
            pl.BlockSpec(memory_space=pltpu.MemorySpace.VMEM),
            pl.BlockSpec(memory_space=pltpu.MemorySpace.VMEM),
            pl.BlockSpec(memory_space=pltpu.MemorySpace.VMEM),
        ],
        out_specs=pl.BlockSpec(memory_space=pltpu.MemorySpace.VMEM),
    )(x2d, w1_bf16, w2_bf16)
    return out2d.reshape(bsz, L, F)


# ------------------------------ params / reference ---------------------------
def build_params(key, in_feature, d_ff=D_FF, scale=0.1):
    k1, k2 = jax.random.split(key)
    w1 = scale * jax.random.normal(k1, (in_feature, d_ff), dtype=jnp.float32)
    w2 = scale * jax.random.normal(k2, (d_ff, in_feature), dtype=jnp.float32)
    # Weights stored / passed in as bf16 (MXU-native, halves weight DMA bytes).
    return w1.astype(jnp.bfloat16), w2.astype(jnp.bfloat16)


def reference(x2d, w1_bf16, w2_bf16):
    """Pure-JAX reference of the PyTorch forward with the same numerics
    (bf16 matmul operands, f32 accumulation, f32 residual + LayerNorm)."""
    h = jnp.maximum(
        jnp.dot(x2d.astype(jnp.bfloat16), w1_bf16,
                preferred_element_type=jnp.float32), 0.0)
    o = jnp.dot(h.astype(jnp.bfloat16), w2_bf16,
                preferred_element_type=jnp.float32)
    y = o + x2d
    mu = jnp.mean(y, axis=-1, keepdims=True)
    var = jnp.mean((y - mu) ** 2, axis=-1, keepdims=True)
    return (y - mu) / jnp.sqrt(var + EPS)


# ----------------------------------- main ------------------------------------
if __name__ == "__main__":
    key = jax.random.PRNGKey(0)
    kx, kxf, kp, kpf = jax.random.split(key, 4)

    # Mode 1: onFrequency=False / in_feature=None -> feature dim = d_model.
    # x: [B, SEQ, D_MODEL] -> M = B*SEQ = 256 rows per launch.
    x = jax.random.normal(kx, (B, SEQ, D_MODEL), dtype=jnp.float32)
    w1, w2 = build_params(kp, D_MODEL)
    out = poswise_feed_forward(x, w1, w2)

    # Mode 2: onFrequency=True -> feature dim = feature_max_len (input is the
    # transposed [B, d_model, feature_max_len] tensor in the speech model).
    # -> M = B*D_MODEL = 256 rows per launch.
    xf = jax.random.normal(kxf, (B, D_MODEL, FEATURE_MAX_LEN), dtype=jnp.float32)
    w1f, w2f = build_params(kpf, FEATURE_MAX_LEN)
    outf = poswise_feed_forward(xf, w1f, w2f)

    jax.block_until_ready((out, outf))

    assert out.shape == (B, SEQ, D_MODEL)
    assert outf.shape == (B, D_MODEL, FEATURE_MAX_LEN)
    assert out.dtype == jnp.float32 and outf.dtype == jnp.float32

    # Correctness vs. plain-JAX reference of the PyTorch forward.
    ref = reference(x.reshape(-1, D_MODEL), w1, w2).reshape(x.shape)
    reff = reference(xf.reshape(-1, FEATURE_MAX_LEN), w1f, w2f).reshape(xf.shape)
    assert jnp.allclose(out, ref, atol=2e-2, rtol=2e-2), \
        float(jnp.max(jnp.abs(out - ref)))
    assert jnp.allclose(outf, reff, atol=2e-2, rtol=2e-2), \
        float(jnp.max(jnp.abs(outf - reff)))

    print("KERNEL_OK")
</pallas_src>

<mosaic_0001>
module attributes {stable_mosaic.version = 11 : i64} {
  func.func @poswise_ffn_kernel(%arg0: memref<256x128xf32, #tpu.memory_space<vmem>>, %arg1: memref<128x256xbf16, #tpu.memory_space<vmem>>, %arg2: memref<256x128xbf16, #tpu.memory_space<vmem>>, %arg3: memref<256x128xf32, #tpu.memory_space<vmem>>) attributes {dimension_semantics = [], scalar_prefetch = 0 : i64, scratch_operands = 0 : i64, tpu.core_type = #tpu.core_type<tc>} {
    %c0 = arith.constant 0 : index
    %c0_0 = arith.constant 0 : index
    %0 = vector.load %arg0[%c0, %c0_0] : memref<256x128xf32, #tpu.memory_space<vmem>>, vector<256x128xf32>
    %1 = arith.truncf %0 : vector<256x128xf32> to vector<256x128xbf16>
    %c0_1 = arith.constant 0 : index
    %c0_2 = arith.constant 0 : index
    %2 = vector.load %arg1[%c0_1, %c0_2] : memref<128x256xbf16, #tpu.memory_space<vmem>>, vector<128x256xbf16>
    %cst = arith.constant dense<0.000000e+00> : vector<256x256xf32>
    %3 = tpu.matmul %1, %2, %cst {dimension_numbers = #tpu.dot_dimension_numbers<[1], [0], [0], [1], [0, 0, 1, 1], [], []>} : vector<256x128xbf16>, vector<128x256xbf16>, vector<256x256xf32> -> vector<256x256xf32>
    %cst_3 = arith.constant 0.000000e+00 : f32
    %4 = vector.broadcast %cst_3 : f32 to vector<256x256xf32>
    %5 = arith.maximumf %3, %4 : vector<256x256xf32>
    %6 = arith.truncf %5 : vector<256x256xf32> to vector<256x256xbf16>
    %c0_4 = arith.constant 0 : index
    %c0_5 = arith.constant 0 : index
    %7 = vector.load %arg2[%c0_4, %c0_5] : memref<256x128xbf16, #tpu.memory_space<vmem>>, vector<256x128xbf16>
    %cst_6 = arith.constant dense<0.000000e+00> : vector<256x128xf32>
    %8 = tpu.matmul %6, %7, %cst_6 {dimension_numbers = #tpu.dot_dimension_numbers<[1], [0], [0], [1], [0, 0, 1, 1], [], []>} : vector<256x256xbf16>, vector<256x128xbf16>, vector<256x128xf32> -> vector<256x128xf32>
    %9 = arith.addf %8, %0 : vector<256x128xf32>
    %cst_7 = arith.constant dense<0.000000e+00> : vector<256xf32>
    %10 = vector.multi_reduction <add>, %9, %cst_7 [1] : vector<256x128xf32> to vector<256xf32>
    %11 = vector.shape_cast %10 : vector<256xf32> to vector<256x1xf32>
    %12 = arith.mulf %9, %9 : vector<256x128xf32>
    %cst_8 = arith.constant dense<0.000000e+00> : vector<256xf32>
    %13 = vector.multi_reduction <add>, %12, %cst_8 [1] : vector<256x128xf32> to vector<256xf32>
    %14 = vector.shape_cast %13 : vector<256xf32> to vector<256x1xf32>
    %cst_9 = arith.constant 7.812500e-03 : f32
    %15 = vector.broadcast %cst_9 : f32 to vector<256x1xf32>
    %16 = arith.mulf %11, %15 : vector<256x1xf32>
    %cst_10 = arith.constant 7.812500e-03 : f32
    %17 = vector.broadcast %cst_10 : f32 to vector<256x1xf32>
    %18 = arith.mulf %14, %17 : vector<256x1xf32>
    %19 = arith.mulf %16, %16 : vector<256x1xf32>
    %20 = arith.subf %18, %19 : vector<256x1xf32>
    %21 = vector.broadcast %16 : vector<256x1xf32> to vector<256x128xf32>
    %22 = arith.subf %9, %21 : vector<256x128xf32>
    %cst_11 = arith.constant 9.99999974E-6 : f32
    %23 = vector.broadcast %cst_11 : f32 to vector<256x1xf32>
    %24 = arith.addf %20, %23 : vector<256x1xf32>
    %25 = math.rsqrt %24 : vector<256x1xf32>
    %26 = vector.broadcast %25 : vector<256x1xf32> to vector<256x128xf32>
    %27 = arith.mulf %22, %26 : vector<256x128xf32>
    %c0_12 = arith.constant 0 : index
    %c0_13 = arith.constant 0 : index
    %28 = vector.load %arg3[%c0_12, %c0_13] : memref<256x128xf32, #tpu.memory_space<vmem>>, vector<256x128xf32>
    tpu.vector_store %arg3[%c0_12, %c0_13], %27 {strides = array<i32>} : memref<256x128xf32, #tpu.memory_space<vmem>>, vector<256x128xf32>,
    return
  }
}

</mosaic_0001>

<bundles_post_ra>
// kernel: tpu_custom_call.1
= control target key start
LH: loop header
LB: loop body
LE: loop exit
PB: predicated region body
PF: predicated region fallthrough
CT: control target
= control target key end

     0   :  { %8 = vsyncpa [#allocation3], 0  ;;  %s2085_s0 = inlined_call_operand.hbm [shape: f32[256,128], index: 0, kind: input, shape index: {}]   ;;  %s2086_s1 = inlined_call_operand.hbm [shape: bf16[128,256], index: 1, kind: input, shape index: {}]   ;;  %s2087_s2 = inlined_call_operand.hbm [shape: bf16[256,128], index: 2, kind: input, shape index: {}]   ;;  %s2088_s3 = inlined_call_operand.hbm [shape: f32[256,128], index: 3, kind: output, shape index: {}]  }
   0x1   :  { %9 = vsyncpa [#allocation6], 0 }
   0x2   :  { %10 = vsyncpa [#allocation4], 0  ;;  %s1596_s12 = smov [#allocation5]   ;;  %s1597_s14 = smov [#allocation2]  }
   0x3   :  { %s28_s13 = sshll.u32 %s1596_s12, 4  ;;  %s16_s15 = sshll.u32 %s1597_s14, 4  ;;  %s29_s13 = int_to_ptr.vmem [resolvable:$true] %s28_s13  ;;  %s1625_s15 = int_to_ptr.vmem [resolvable:$true] %s16_s15 }
   0x4   :  { %s1502_s18 = scalar_lea.hbm %s2086_s1, 2048 }
   0x5   :  { %p1503_p0 = scmp.ne.s32.totalorder %s2086_s1, %s1502_s18  ;;  %p1506_p1 = scmp.lt.u32.totalorder %s1502_s18, %s2086_s1 }
   0x7   :  { %p1508_p2 = pnand %p1506_p1, %p1503_p0 }
   0x9   :  { %1511 = shalt.err (!%p1508_p2)
}
   0xa   :  { %s1512_s23 = scalar_lea.vmem %s29_s13, 2048  ;;  %p1517_p4 = scmp.lt.s32.totalorder %s29_s13, %s29_s13 }
   0xb   :  { %p1513_p3 = scmp.ne.s32.totalorder %s29_s13, %s1512_s23  ;;  %p1518_p5 = scmp.lt.s32.totalorder %s1512_s23, %s1512_s23 }
   0xd   :  { %p1519_p6 = por %p1518_p5, %p1517_p4 }
   0xf   :  { %p1520_p7 = pnand %p1519_p6, %p1513_p3 }
  0x11   :  { %1523 = shalt.err (!%p1520_p7)
}
  0x12   :  { %s1598_s24 = smov 128   ;;  %s1599_s25 = smov 8  }
  0x13   :  { %34 = dma.hbm_to_vmem [thread:$0]  %s2086_s1, 2048, %s29_s13, [#allocation6], %s1598_s24, %s1598_s24, %s1599_s25  }
  0x14   :  { %s1524_s30 = scalar_lea.hbm %s2085_s0, 4096 }
  0x15   :  { %p1525_p8 = scmp.ne.s32.totalorder %s2085_s0, %s1524_s30  ;;  %p1528_p9 = scmp.lt.u32.totalorder %s1524_s30, %s2085_s0 }
  0x17   :  { %p1530_p10 = pnand %p1528_p9, %p1525_p8 }
  0x19   :  { %1533 = shalt.err (!%p1530_p10)
}
  0x1a   :  { %s1534_s8 = scalar_lea.vmem %s1625_s15, 4096  ;;  %p1539_p12 = scmp.lt.s32.totalorder %s1625_s15, %s1625_s15 }
  0x1b   :  { %p1535_p11 = scmp.ne.s32.totalorder %s1625_s15, %s1534_s8  ;;  %p1540_p13 = scmp.lt.s32.totalorder %s1534_s8, %s1534_s8 }
  0x1d   :  { %p1541_p0 = por %p1540_p13, %p1539_p12 }
  0x1f   :  { %p1542_p1 = pnand %p1541_p0, %p1535_p11 }
  0x21   :  { %1545 = shalt.err (!%p1542_p1)
}
  0x22   :  { %22 = dma.hbm_to_vmem [thread:$0]  %s2085_s0, 4096, %s1625_s15, [#allocation3], %s1598_s24, %s1598_s24, %s1599_s25  }
  0x23   :  { %s1600_s10 = smov [#allocation7]   ;;  %s1546_s14 = scalar_lea.hbm %s2087_s2, 2048 }
  0x24   :  { %s40_s11 = sshll.u32 %s1600_s10, 4  ;;  %p1547_p2 = scmp.ne.s32.totalorder %s2087_s2, %s1546_s14  ;;  %s41_s11 = int_to_ptr.vmem [resolvable:$true] %s40_s11 }
  0x25   :  { %p1550_p3 = scmp.lt.u32.totalorder %s1546_s14, %s2087_s2 }
  0x27   :  { %p1552_p4 = pnand %p1550_p3, %p1547_p2 }
  0x29   :  { %1555 = shalt.err (!%p1552_p4)
}
  0x2a   :  { %s1556_s20 = scalar_lea.vmem %s41_s11, 2048  ;;  %p1561_p6 = scmp.lt.s32.totalorder %s41_s11, %s41_s11 }
  0x2b   :  { %p1557_p5 = scmp.ne.s32.totalorder %s41_s11, %s1556_s20  ;;  %p1562_p7 = scmp.lt.s32.totalorder %s1556_s20, %s1556_s20 }
  0x2d   :  { %p1563_p8 = por %p1562_p7, %p1561_p6 }
  0x2f   :  { %p1564_p9 = pnand %p1563_p8, %p1557_p5 }
  0x31   :  { %1567 = shalt.err (!%p1564_p9)
}
  0x32   :  { %s1601_s0 = smov 64   ;;  %s1602_s15 = smov 4  }
  0x33   :  { %46 = dma.hbm_to_vmem [thread:$0]  %s2087_s2, 2048, %s41_s11, [#allocation6], %s1601_s0, %s1601_s0, %s1602_s15  }
  0x34   :  { %1590 = dma.done.wait [#allocation3], 4096  }
  0x35   :  { %1591 = vsyncadd [#allocation3], 4294963200 }
  0x36   :  { %1592 = dma.done.wait [#allocation6], 4096  }
  0x37   :  { %1593 = vsyncadd [#allocation6], 4294963200  ;;  %v1603_v0 = vmov 0   ;;  %v1398_v1 = vld [vmem:[#allocation5 + $0x4] ss:$8 sps:$4 sm:$0xff]   ;;  %v1426_v24 = vld [vmem:[#allocation7 + $0x50] sm:$0xff]  }
  0x38   :  { %233 = vmatprep.mubr.bf16.mxu0 %v1603_v0  ;;  %v1400_v2 = vld [vmem:[#allocation5] ss:$8 sps:$4 sm:$0xff]   ;;  %201 = vmatprep.subr.bf16.mxu0 %v1398_v1  ;;  %v1401_v3 = vld [vmem:[#allocation5 + $0x14] ss:$8 sps:$4 sm:$0xff]   ;;  %v1403_v4 = vld [vmem:[#allocation5 + $0x10] ss:$8 sps:$4 sm:$0xff]  }
  0x39   :  { %202 = vmatpush1.bf16.msra.mxu0 %v1400_v2  ;;  %v1404_v5 = vld [vmem:[#allocation5 + $0x24] ss:$8 sps:$4 sm:$0xff]   ;;  %v1406_v6 = vld [vmem:[#allocation5 + $0x20] ss:$8 sps:$4 sm:$0xff]   ;;  %v1407_v7 = vld [vmem:[#allocation5 + $0x34] ss:$8 sps:$4 sm:$0xff]  }
  0x3a   :  { %203 = vmatprep.subr.bf16.mxu0 %v1401_v3  ;;  %v1409_v8 = vld [vmem:[#allocation5 + $0x30] ss:$8 sps:$4 sm:$0xff]   ;;  %v1410_v9 = vld [vmem:[#allocation5 + $0x44] ss:$8 sps:$4 sm:$0xff]   ;;  %v1412_v10 = vld [vmem:[#allocation5 + $0x40] ss:$8 sps:$4 sm:$0xff]  }
  0x3b   :  { %v1413_v11 = vld [vmem:[#allocation5 + $0x54] ss:$8 sps:$4 sm:$0xff]   ;;  %v1415_v12 = vld [vmem:[#allocation5 + $0x50] ss:$8 sps:$4 sm:$0xff]   ;;  %v1416_v13 = vld [vmem:[#allocation5 + $0x64] ss:$8 sps:$4 sm:$0xff]  }
  0x3c   :  { %v1418_v14 = vld [vmem:[#allocation5 + $0x60] ss:$8 sps:$4 sm:$0xff]   ;;  %v1419_v15 = vld [vmem:[#allocation5 + $0x74] ss:$8 sps:$4 sm:$0xff]   ;;  %v1421_v19 = vld [vmem:[#allocation5 + $0x70] ss:$8 sps:$4 sm:$0xff]  }
  0x3d   :  { %204 = vmatpush1.bf16.msra.mxu0 %v1403_v4  ;;  %v1422_v16 = vld [vmem:[#allocation7 + $0x40] sm:$0xff]   ;;  %v1424_v18 = vld [vmem:[#allocation7 + $0x48] sm:$0xff]   ;;  %v1427_v25 = vld [vmem:[#allocation7 + $0x10] sm:$0xff]   ;;  %s1604_s2 = smov [#allocation8]  }
  0x3e   :  { %205 = vmatprep.subr.bf16.mxu0 %v1404_v5  ;;  %v1423_v17 = vld [vmem:[#allocation7] sm:$0xff]   ;;  %v1677_v21 = vld [vmem:[#allocation2 + $0x8] sm:$0xff]  ;;  %1277 = vmatprep.subr.bf16.mxu1 %v1422_v16  ;;  %v1681_v26 = vld [vmem:[#allocation2 + $0x10] sm:$0xff]  ;;  %s1232_s23 = sshll.u32 %s1604_s2, 4  ;;  %s1233_s23 = int_to_ptr.vmem [resolvable:$true] %s1232_s23 }
  0x3f   :  { %v1675_v20 = vld [vmem:[#allocation2] sm:$0xff]  ;;  %1278 = vmatpush3.bf16.msra.mxu1 %v1423_v17  ;;  %v1425_v22 = vld [vmem:[#allocation7 + $0x8] sm:$0xff]   ;;  %v1683_v27 = vld [vmem:[#allocation2 + $0x18] sm:$0xff]  ;;  %s1568_s26 = scalar_lea.vmem %s1233_s23, 4096  ;;  %p1573_p11 = scmp.lt.s32.totalorder %s1233_s23, %s1233_s23 }
  0x40   :  { %v89_v23 = vpack.c.bf16 %v1677_v21, %v1675_v20  ;;  %1279 = vmatprep.subr.bf16.mxu1 %v1424_v18  ;;  %v1428_v28 = vld [vmem:[#allocation7 + $0x58] sm:$0xff]   ;;  %v90_v30 = vpack.c.bf16 %v1683_v27, %v1681_v26  ;;  %v1430_v31 = vld [vmem:[#allocation7 + $0x60] sm:$0xff]   ;;  %v1432_v33 = vld [vmem:[#allocation7 + $0x68] sm:$0xff]   ;;  %p1569_p10 = scmp.ne.s32.totalorder %s1233_s23, %s1568_s26  ;;  %p1574_p12 = scmp.lt.s32.totalorder %s1568_s26, %s1568_s26 }
  0x41   :  { %206 = vmatpush1.bf16.msra.mxu0 %v1406_v6  ;;  %v1429_v29 = vld [vmem:[#allocation7 + $0x18] sm:$0xff]   ;;  %v1431_v32 = vld [vmem:[#allocation7 + $0x20] sm:$0xff]   ;;  %v1691_v35 = vld [vmem:[#allocation2 + $0x28] sm:$0xff] }
  0x42   :  { %207 = vmatprep.subr.bf16.mxu0 %v1407_v7  ;;  %v1689_v34 = vld [vmem:[#allocation2 + $0x20] sm:$0xff]  ;;  %v1433_v36 = vld [vmem:[#allocation7 + $0x28] sm:$0xff]   ;;  %v1696_v38 = vld [vmem:[#allocation2 + $0x30] sm:$0xff]  ;;  %p1575_p13 = por %p1574_p12, %p1573_p11 }
  0x43   :  { %1280 = vmatpush3.bf16.msra.mxu1 %v1425_v22  ;;  %v91_v37 = vpack.c.bf16 %v1691_v35, %v1689_v34  ;;  %v1698_v39 = vld [vmem:[#allocation2 + $0x38] sm:$0xff]  ;;  %v1703_v41 = vld [vmem:[#allocation2 + $0x40] sm:$0xff]  ;;  %v1705_v42 = vld [vmem:[#allocation2 + $0x48] sm:$0xff] }
  0x44   :  { %1281 = vmatprep.subr.bf16.mxu1 %v1426_v24  ;;  %v92_v40 = vpack.c.bf16 %v1698_v39, %v1696_v38  ;;  %v93_v43 = vpack.c.bf16 %v1705_v42, %v1703_v41  ;;  %v1710_v44 = vld [vmem:[#allocation2 + $0x50] sm:$0xff]  ;;  %v1712_v45 = vld [vmem:[#allocation2 + $0x58] sm:$0xff]  ;;  %v1717_v47 = vld [vmem:[#allocation2 + $0x60] sm:$0xff]  ;;  %p1576_p0 = pnand %p1575_p13, %p1569_p10 }
  0x45   :  { %208 = vmatpush1.bf16.msra.mxu0 %v1409_v8  ;;  %v94_v46 = vpack.c.bf16 %v1712_v45, %v1710_v44  ;;  %v1719_v48 = vld [vmem:[#allocation2 + $0x68] sm:$0xff]  ;;  %v1724_v50 = vld [vmem:[#allocation2 + $0x70] sm:$0xff]  ;;  %v1726_v51 = vld [vmem:[#allocation2 + $0x78] sm:$0xff] }
  0x46   :  { %209 = vmatprep.subr.bf16.mxu0 %v1410_v9  ;;  %v95_v49 = vpack.c.bf16 %v1719_v48, %v1717_v47  ;;  %v96_v52 = vpack.c.bf16 %v1726_v51, %v1724_v50  ;;  %v1731_v53 = vld [vmem:[#allocation2 + $0x80] sm:$0xff]  ;;  %v1733_v54 = vld [vmem:[#allocation2 + $0x88] sm:$0xff]  ;;  %v1738_v56 = vld [vmem:[#allocation2 + $0x90] sm:$0xff] }
  0x47   :  { %1282 = vmatpush3.bf16.msra.mxu1 %v1427_v25  ;;  %v97_v55 = vpack.c.bf16 %v1733_v54, %v1731_v53  ;;  %v1740_v57 = vld [vmem:[#allocation2 + $0x98] sm:$0xff]  ;;  %v1745_v59 = vld [vmem:[#allocation2 + $0xa0] sm:$0xff]  ;;  %v1747_v60 = vld [vmem:[#allocation2 + $0xa8] sm:$0xff] }
  0x48   :  { %1283 = vmatprep.subr.bf16.mxu1 %v1428_v28  ;;  %v98_v58 = vpack.c.bf16 %v1740_v57, %v1738_v56  ;;  %v99_v61 = vpack.c.bf16 %v1747_v60, %v1745_v59  ;;  %v1752_v62 = vld [vmem:[#allocation2 + $0xb0] sm:$0xff]  ;;  %v1754_v63 = vld [vmem:[#allocation2 + $0xb8] sm:$0xff]  ;;  %v1759_v6 = vld [vmem:[#allocation2 + $0xc0] sm:$0xff] }
  0x49   :  { %210 = vmatpush1.bf16.msra.mxu0 %v1412_v10  ;;  %v1434_v1 = vld [vmem:[#allocation7 + $0x70] sm:$0xff]   ;;  %v100_v3 = vpack.c.bf16 %v1754_v63, %v1752_v62  ;;  %v1436_v4 = vld [vmem:[#allocation7 + $0x78] sm:$0xff]   ;;  %v1761_v7 = vld [vmem:[#allocation2 + $0xc8] sm:$0xff] }
  0x4a   :  { %211 = vmatprep.subr.bf16.mxu0 %v1413_v11  ;;  %v1435_v2 = vld [vmem:[#allocation7 + $0x30] sm:$0xff]   ;;  %v1437_v5 = vld [vmem:[#allocation7 + $0x38] sm:$0xff]   ;;  %v101_v8 = vpack.c.bf16 %v1761_v7, %v1759_v6 }
  0x4b   :  { %1284 = vmatpush3.bf16.msra.mxu1 %v1429_v29  ;;  %v1766_v9 = vld [vmem:[#allocation2 + $0xd0] sm:$0xff]  ;;  %v1768_v10 = vld [vmem:[#allocation2 + $0xd8] sm:$0xff] }
  0x4c   :  { %1285 = vmatprep.subr.bf16.mxu1 %v1430_v31  ;;  %v102_v11 = vpack.c.bf16 %v1768_v10, %v1766_v9  ;;  %v1782_v16 = vld [vmem:[#allocation2 + $0xf8] sm:$0xff] }
  0x4d   :  { %212 = vmatpush1.bf16.msra.mxu0 %v1415_v12  ;;  %v1773_v12 = vld [vmem:[#allocation2 + $0xe0] sm:$0xff] }
  0x4e   :  { %213 = vmatprep.subr.bf16.mxu0 %v1416_v13  ;;  %v1775_v13 = vld [vmem:[#allocation2 + $0xe8] sm:$0xff] }
  0x4f   :  { %1286 = vmatpush3.bf16.msra.mxu1 %v1431_v32 }
  0x50   :  { %1287 = vmatprep.subr.bf16.mxu1 %v1432_v33 }
  0x51   :  { %214 = vmatpush1.bf16.msra.mxu0 %v1418_v14  ;;  %v103_v14 = vpack.c.bf16 %v1775_v13, %v1773_v12 }
  0x52   :  { %215 = vmatprep.subr.bf16.mxu0 %v1419_v15  ;;  %v1780_v15 = vld [vmem:[#allocation2 + $0xf0] sm:$0xff] }
  0x53   :  { %1288 = vmatpush3.bf16.msra.mxu1 %v1433_v36  ;;  %v104_v17 = vpack.c.bf16 %v1782_v16, %v1780_v15 }
  0x54   :  { %1289 = vmatprep.subr.bf16.mxu1 %v1434_v1 }
  0x55   :  { %216 = vmatpush1.bf16.msra.mxu0 %v1421_v19 }
  0x57   :  { %1290 = vmatpush3.bf16.msra.mxu1 %v1435_v2 }
  0x58   :  { %234 = vmatmul.mubr.bf16.vlgmr.msra.gmra.mrb[0].mxu0 %v89_v23  ;;  %1291 = vmatprep.subr.bf16.mxu1 %v1436_v4 }
  0x59   :  { %243 = vmatprep.mubr.bf16.mxu0 %v1603_v0 }
  0x5b   :  { %1292 = vmatpush3.bf16.msra.mxu1 %v1437_v5 }
  0x60   :  { %244 = vmatmul.mubr.bf16.gmra.mrb[4].mxu0 %v90_v30 }
  0x61   :  { %253 = vmatprep.mubr.bf16.mxu0 %v1603_v0 }
  0x68   :  { %254 = vmatmul.mubr.bf16.gmra.mrb[8].mxu0 %v91_v37 }
  0x69   :  { %263 = vmatprep.mubr.bf16.mxu0 %v1603_v0 }
  0x70   :  { %264 = vmatmul.mubr.bf16.gmra.mrb[12].mxu0 %v92_v40 }
  0x71   :  { %273 = vmatprep.mubr.bf16.mxu0 %v1603_v0 }
  0x78   :  { %274 = vmatmul.mubr.bf16.gmra.mrb[16].mxu0 %v93_v43 }
  0x79   :  { %283 = vmatprep.mubr.bf16.mxu0 %v1603_v0 }
  0x80   :  { %284 = vmatmul.mubr.bf16.gmra.mrb[20].mxu0 %v94_v46 }
  0x81   :  { %293 = vmatprep.mubr.bf16.mxu0 %v1603_v0 }
  0x88   :  { %294 = vmatmul.mubr.bf16.gmra.mrb[24].mxu0 %v95_v49 }
  0x89   :  { %303 = vmatprep.mubr.bf16.mxu0 %v1603_v0 }
  0x90   :  { %304 = vmatmul.mubr.bf16.gmra.mrb[28].mxu0 %v96_v52 }
  0x91   :  { %313 = vmatprep.mubr.bf16.mxu0 %v1603_v0 }
  0x98   :  { %314 = vmatmul.mubr.bf16.gmra.mrb[32].mxu0 %v97_v55 }
  0x99   :  { %323 = vmatprep.mubr.bf16.mxu0 %v1603_v0 }
  0xa0   :  { %324 = vmatmul.mubr.bf16.gmra.mrb[36].mxu0 %v98_v58 }
  0xa1   :  { %333 = vmatprep.mubr.bf16.mxu0 %v1603_v0 }
  0xa8   :  { %334 = vmatmul.mubr.bf16.gmra.mrb[40].mxu0 %v99_v61 }
  0xa9   :  { %343 = vmatprep.mubr.bf16.mxu0 %v1603_v0 }
  0xb0   :  { %344 = vmatmul.mubr.bf16.gmra.mrb[44].mxu0 %v100_v3 }
  0xb1   :  { %353 = vmatprep.mubr.bf16.mxu0 %v1603_v0 }
  0xb8   :  { %354 = vmatmul.mubr.bf16.gmra.mrb[48].mxu0 %v101_v8 }
  0xb9   :  { %363 = vmatprep.mubr.bf16.mxu0 %v1603_v0 }
  0xc0   :  { %364 = vmatmul.mubr.bf16.gmra.mrb[52].mxu0 %v102_v11 }
  0xc1   :  { %373 = vmatprep.mubr.bf16.mxu0 %v1603_v0 }
  0xc8   :  { %374 = vmatmul.mubr.bf16.gmra.mrb[56].mxu0 %v103_v14 }
  0xc9   :  { %383 = vmatprep.mubr.bf16.mxu0 %v1603_v0 }
  0xd0   :  { %384 = vmatmul.mubr.bf16.gmra.mrb[60].mxu0 %v104_v17 }
 0x12b   :  { %v235_v18 = vpop.f32.mrb[0].mxu0 }
 0x12c   :  { %v237_v19 = vpop.f32.mrb[1].mxu0  ;;  %v394_v23 = vmax.f32 %v235_v18, 0.0 }
 0x12d   :  { %v239_v22 = vpop.f32.mrb[2].mxu0  ;;  %v395_v28 = vmax.f32 %v237_v19, 0.0 }
 0x12e   :  { %v396_v24 = vmax.f32 %v239_v22, 0.0  ;;  %v241_v25 = vpop.f32.mrb[3].mxu0 }
 0x12f   :  { %v397_v29 = vmax.f32 %v241_v25, 0.0 }
 0x130   :  { %v458_v30 = vpack.c.bf16 %v396_v24, %v394_v23 }
 0x131   :  { %v459_v31 = vpack.c.bf16 %v397_v29, %v395_v28 }
 0x133   :  { %v245_v32 = vpop.f32.mrb[4].mxu0  ;;  %650 = vmatprep.mubr.bf16.mxu1 %v459_v31 }
 0x134   :  { %v247_v0 = vpop.f32.mrb[5].mxu0  ;;  %651 = vmatmul.mubr.bf16.vlgmr.msra.gmra.mrb[0].mxu1 %v458_v30  ;;  %v398_v36 = vmax.f32 %v245_v32, 0.0 }
 0x135   :  { %v249_v33 = vpop.f32.mrb[6].mxu0  ;;  %v399_v43 = vmax.f32 %v247_v0, 0.0 }
 0x136   :  { %v400_v37 = vmax.f32 %v249_v33, 0.0  ;;  %v251_v40 = vpop.f32.mrb[7].mxu0 }
 0x137   :  { %v401_v46 = vmax.f32 %v251_v40, 0.0 }
 0x138   :  { %v460_v49 = vpack.c.bf16 %v400_v37, %v398_v36 }
 0x139   :  { %v461_v52 = vpack.c.bf16 %v401_v46, %v399_v43 }
 0x13b   :  { %v255_v55 = vpop.f32.mrb[8].mxu0  ;;  %658 = vmatprep.mubr.bf16.mxu1 %v461_v52 }
 0x13c   :  { %v402_v58 = vmax.f32 %v255_v55, 0.0  ;;  %v257_v61 = vpop.f32.mrb[9].mxu0  ;;  %659 = vmatmul.mubr.bf16.gmra.mrb[4].mxu1 %v460_v49 }
 0x13d   :  { %v403_v1 = vmax.f32 %v257_v61, 0.0  ;;  %v259_v2 = vpop.f32.mrb[10].mxu0 }
 0x13e   :  { %v404_v3 = vmax.f32 %v259_v2, 0.0  ;;  %v261_v4 = vpop.f32.mrb[11].mxu0 }
 0x13f   :  { %v405_v5 = vmax.f32 %v261_v4, 0.0 }
 0x140   :  { %v462_v8 = vpack.c.bf16 %v404_v3, %v402_v58 }
 0x141   :  { %v463_v11 = vpack.c.bf16 %v405_v5, %v403_v1 }
 0x143   :  { %v265_v14 = vpop.f32.mrb[12].mxu0  ;;  %666 = vmatprep.mubr.bf16.mxu1 %v463_v11 }
 0x144   :  { %v406_v17 = vmax.f32 %v265_v14, 0.0  ;;  %v267_v18 = vpop.f32.mrb[13].mxu0  ;;  %667 = vmatmul.mubr.bf16.gmra.mrb[8].mxu1 %v462_v8 }
 0x145   :  { %v407_v19 = vmax.f32 %v267_v18, 0.0  ;;  %v269_v22 = vpop.f32.mrb[14].mxu0 }
 0x146   :  { %v408_v23 = vmax.f32 %v269_v22, 0.0  ;;  %v271_v24 = vpop.f32.mrb[15].mxu0 }
 0x147   :  { %v409_v25 = vmax.f32 %v271_v24, 0.0 }
 0x148   :  { %v464_v28 = vpack.c.bf16 %v408_v23, %v406_v17 }
 0x149   :  { %v465_v29 = vpack.c.bf16 %v409_v25, %v407_v19 }
 0x14b   :  { %v275_v30 = vpop.f32.mrb[16].mxu0  ;;  %674 = vmatprep.mubr.bf16.mxu1 %v465_v29 }
 0x14c   :  { %v410_v31 = vmax.f32 %v275_v30, 0.0  ;;  %v277_v32 = vpop.f32.mrb[17].mxu0  ;;  %675 = vmatmul.mubr.bf16.gmra.mrb[12].mxu1 %v464_v28 }
 0x14d   :  { %v411_v0 = vmax.f32 %v277_v32, 0.0  ;;  %v279_v33 = vpop.f32.mrb[18].mxu0 }
 0x14e   :  { %v412_v36 = vmax.f32 %v279_v33, 0.0  ;;  %v281_v37 = vpop.f32.mrb[19].mxu0 }
 0x14f   :  { %v413_v40 = vmax.f32 %v281_v37, 0.0 }
 0x150   :  { %v466_v43 = vpack.c.bf16 %v412_v36, %v410_v31 }
 0x151   :  { %v467_v46 = vpack.c.bf16 %v413_v40, %v411_v0 }
 0x153   :  { %v285_v49 = vpop.f32.mrb[20].mxu0  ;;  %682 = vmatprep.mubr.bf16.mxu1 %v467_v46 }
 0x154   :  { %v414_v52 = vmax.f32 %v285_v49, 0.0  ;;  %v287_v55 = vpop.f32.mrb[21].mxu0  ;;  %683 = vmatmul.mubr.bf16.gmra.mrb[16].mxu1 %v466_v43 }
 0x155   :  { %v415_v58 = vmax.f32 %v287_v55, 0.0  ;;  %v289_v61 = vpop.f32.mrb[22].mxu0 }
 0x156   :  { %v416_v1 = vmax.f32 %v289_v61, 0.0  ;;  %v291_v2 = vpop.f32.mrb[23].mxu0 }
 0x157   :  { %v417_v3 = vmax.f32 %v291_v2, 0.0 }
 0x158   :  { %v468_v4 = vpack.c.bf16 %v416_v1, %v414_v52 }
 0x159   :  { %v469_v5 = vpack.c.bf16 %v417_v3, %v415_v58 }
 0x15b   :  { %v295_v8 = vpop.f32.mrb[24].mxu0  ;;  %690 = vmatprep.mubr.bf16.mxu1 %v469_v5 }
 0x15c   :  { %v418_v11 = vmax.f32 %v295_v8, 0.0  ;;  %v297_v14 = vpop.f32.mrb[25].mxu0  ;;  %691 = vmatmul.mubr.bf16.gmra.mrb[20].mxu1 %v468_v4 }
 0x15d   :  { %v419_v17 = vmax.f32 %v297_v14, 0.0  ;;  %v299_v18 = vpop.f32.mrb[26].mxu0 }
 0x15e   :  { %v420_v19 = vmax.f32 %v299_v18, 0.0  ;;  %v301_v22 = vpop.f32.mrb[27].mxu0 }
 0x15f   :  { %v421_v23 = vmax.f32 %v301_v22, 0.0 }
 0x160   :  { %v470_v24 = vpack.c.bf16 %v420_v19, %v418_v11 }
 0x161   :  { %v471_v25 = vpack.c.bf16 %v421_v23, %v419_v17 }
 0x163   :  { %v305_v28 = vpop.f32.mrb[28].mxu0  ;;  %698 = vmatprep.mubr.bf16.mxu1 %v471_v25 }
 0x164   :  { %v422_v29 = vmax.f32 %v305_v28, 0.0  ;;  %v307_v30 = vpop.f32.mrb[29].mxu0  ;;  %699 = vmatmul.mubr.bf16.gmra.mrb[24].mxu1 %v470_v24 }
 0x165   :  { %v423_v31 = vmax.f32 %v307_v30, 0.0  ;;  %v309_v32 = vpop.f32.mrb[30].mxu0 }
 0x166   :  { %v424_v0 = vmax.f32 %v309_v32, 0.0  ;;  %v311_v33 = vpop.f32.mrb[31].mxu0 }
 0x167   :  { %v425_v36 = vmax.f32 %v311_v33, 0.0 }
 0x168   :  { %v472_v37 = vpack.c.bf16 %v424_v0, %v422_v29 }
 0x169   :  { %v473_v40 = vpack.c.bf16 %v425_v36, %v423_v31 }
 0x16b   :  { %v315_v43 = vpop.f32.mrb[32].mxu0  ;;  %706 = vmatprep.mubr.bf16.mxu1 %v473_v40 }
 0x16c   :  { %v426_v46 = vmax.f32 %v315_v43, 0.0  ;;  %v317_v49 = vpop.f32.mrb[33].mxu0  ;;  %707 = vmatmul.mubr.bf16.gmra.mrb[28].mxu1 %v472_v37 }
 0x16d   :  { %v427_v52 = vmax.f32 %v317_v49, 0.0  ;;  %v319_v55 = vpop.f32.mrb[34].mxu0 }
 0x16e   :  { %v428_v58 = vmax.f32 %v319_v55, 0.0  ;;  %v321_v61 = vpop.f32.mrb[35].mxu0 }
 0x16f   :  { %v429_v1 = vmax.f32 %v321_v61, 0.0 }
 0x170   :  { %v474_v2 = vpack.c.bf16 %v428_v58, %v426_v46 }
 0x171   :  { %v475_v3 = vpack.c.bf16 %v429_v1, %v427_v52 }
 0x173   :  { %v325_v4 = vpop.f32.mrb[36].mxu0  ;;  %714 = vmatprep.mubr.bf16.mxu1 %v475_v3 }
 0x174   :  { %v430_v5 = vmax.f32 %v325_v4, 0.0  ;;  %v327_v8 = vpop.f32.mrb[37].mxu0  ;;  %715 = vmatmul.mubr.bf16.gmra.mrb[32].mxu1 %v474_v2 }
 0x175   :  { %v431_v11 = vmax.f32 %v327_v8, 0.0  ;;  %v329_v14 = vpop.f32.mrb[38].mxu0 }
 0x176   :  { %v432_v17 = vmax.f32 %v329_v14, 0.0  ;;  %v331_v18 = vpop.f32.mrb[39].mxu0 }
 0x177   :  { %v433_v19 = vmax.f32 %v331_v18, 0.0 }
 0x178   :  { %v476_v22 = vpack.c.bf16 %v432_v17, %v430_v5 }
 0x179   :  { %v477_v23 = vpack.c.bf16 %v433_v19, %v431_v11 }
 0x17b   :  { %v335_v24 = vpop.f32.mrb[40].mxu0  ;;  %722 = vmatprep.mubr.bf16.mxu1 %v477_v23 }
 0x17c   :  { %v434_v25 = vmax.f32 %v335_v24, 0.0  ;;  %v337_v28 = vpop.f32.mrb[41].mxu0  ;;  %723 = vmatmul.mubr.bf16.gmra.mrb[36].mxu1 %v476_v22 }
 0x17d   :  { %v435_v29 = vmax.f32 %v337_v28, 0.0  ;;  %v339_v30 = vpop.f32.mrb[42].mxu0 }
 0x17e   :  { %v436_v31 = vmax.f32 %v339_v30, 0.0  ;;  %v341_v32 = vpop.f32.mrb[43].mxu0 }
 0x17f   :  { %v437_v0 = vmax.f32 %v341_v32, 0.0 }
 0x180   :  { %v478_v33 = vpack.c.bf16 %v436_v31, %v434_v25 }
 0x181   :  { %v479_v36 = vpack.c.bf16 %v437_v0, %v435_v29 }
 0x183   :  { %v345_v37 = vpop.f32.mrb[44].mxu0  ;;  %730 = vmatprep.mubr.bf16.mxu1 %v479_v36 }
 0x184   :  { %v438_v40 = vmax.f32 %v345_v37, 0.0  ;;  %v347_v43 = vpop.f32.mrb[45].mxu0  ;;  %731 = vmatmul.mubr.bf16.gmra.mrb[40].mxu1 %v478_v33 }
 0x185   :  { %v439_v46 = vmax.f32 %v347_v43, 0.0  ;;  %v349_v49 = vpop.f32.mrb[46].mxu0 }
 0x186   :  { %v440_v52 = vmax.f32 %v349_v49, 0.0  ;;  %v351_v55 = vpop.f32.mrb[47].mxu0 }
 0x187   :  { %v441_v58 = vmax.f32 %v351_v55, 0.0 }
 0x188   :  { %v480_v61 = vpack.c.bf16 %v440_v52, %v438_v40 }
 0x189   :  { %v481_v1 = vpack.c.bf16 %v441_v58, %v439_v46 }
 0x18b   :  { %v355_v2 = vpop.f32.mrb[48].mxu0  ;;  %738 = vmatprep.mubr.bf16.mxu1 %v481_v1 }
 0x18c   :  { %v442_v3 = vmax.f32 %v355_v2, 0.0  ;;  %v357_v4 = vpop.f32.mrb[49].mxu0  ;;  %739 = vmatmul.mubr.bf16.gmra.mrb[44].mxu1 %v480_v61 }
 0x18d   :  { %v443_v5 = vmax.f32 %v357_v4, 0.0  ;;  %v359_v8 = vpop.f32.mrb[50].mxu0 }
 0x18e   :  { %v444_v11 = vmax.f32 %v359_v8, 0.0  ;;  %v361_v14 = vpop.f32.mrb[51].mxu0 }
 0x18f   :  { %v445_v17 = vmax.f32 %v361_v14, 0.0 }
 0x190   :  { %v482_v18 = vpack.c.bf16 %v444_v11, %v442_v3 }
 0x191   :  { %v483_v19 = vpack.c.bf16 %v445_v17, %v443_v5 }
 0x193   :  { %v365_v22 = vpop.f32.mrb[52].mxu0  ;;  %746 = vmatprep.mubr.bf16.mxu1 %v483_v19 }
 0x194   :  { %v446_v23 = vmax.f32 %v365_v22, 0.0  ;;  %v367_v24 = vpop.f32.mrb[53].mxu0  ;;  %747 = vmatmul.mubr.bf16.gmra.mrb[48].mxu1 %v482_v18 }
 0x195   :  { %v447_v25 = vmax.f32 %v367_v24, 0.0  ;;  %v369_v28 = vpop.f32.mrb[54].mxu0 }
 0x196   :  { %v448_v29 = vmax.f32 %v369_v28, 0.0  ;;  %v371_v30 = vpop.f32.mrb[55].mxu0 }
 0x197   :  { %v449_v31 = vmax.f32 %v371_v30, 0.0 }
 0x198   :  { %v484_v32 = vpack.c.bf16 %v448_v29, %v446_v23 }
 0x199   :  { %v485_v0 = vpack.c.bf16 %v449_v31, %v447_v25 }
 0x19b   :  { %v375_v33 = vpop.f32.mrb[56].mxu0  ;;  %754 = vmatprep.mubr.bf16.mxu1 %v485_v0 }
 0x19c   :  { %v450_v36 = vmax.f32 %v375_v33, 0.0  ;;  %v377_v37 = vpop.f32.mrb[57].mxu0  ;;  %755 = vmatmul.mubr.bf16.gmra.mrb[52].mxu1 %v484_v32 }
 0x19d   :  { %v451_v40 = vmax.f32 %v377_v37, 0.0  ;;  %v379_v43 = vpop.f32.mrb[58].mxu0 }
 0x19e   :  { %v452_v46 = vmax.f32 %v379_v43, 0.0  ;;  %v381_v49 = vpop.f32.mrb[59].mxu0 }
 0x19f   :  { %v453_v52 = vmax.f32 %v381_v49, 0.0 }
 0x1a0   :  { %v486_v55 = vpack.c.bf16 %v452_v46, %v450_v36 }
 0x1a1   :  { %v487_v58 = vpack.c.bf16 %v453_v52, %v451_v40 }
 0x1a3   :  { %v385_v61 = vpop.f32.mrb[60].mxu0  ;;  %762 = vmatprep.mubr.bf16.mxu1 %v487_v58 }
 0x1a4   :  { %v454_v1 = vmax.f32 %v385_v61, 0.0  ;;  %v387_v2 = vpop.f32.mrb[61].mxu0  ;;  %763 = vmatmul.mubr.bf16.gmra.mrb[56].mxu1 %v486_v55 }
 0x1a5   :  { %v455_v3 = vmax.f32 %v387_v2, 0.0  ;;  %v389_v4 = vpop.f32.mrb[62].mxu0 }
 0x1a6   :  { %v456_v5 = vmax.f32 %v389_v4, 0.0  ;;  %v391_v8 = vpop.f32.mrb[63].mxu0 }
 0x1a7   :  { %v457_v11 = vmax.f32 %v391_v8, 0.0 }
 0x1a8   :  { %v488_v14 = vpack.c.bf16 %v456_v5, %v454_v1 }
 0x1a9   :  { %v489_v17 = vpack.c.bf16 %v457_v11, %v455_v3 }
 0x1ab   :  { %770 = vmatprep.mubr.bf16.mxu1 %v489_v17 }
 0x1ac   :  { %771 = vmatmul.mubr.bf16.gmra.mrb[60].mxu1 %v488_v14 }
 0x207   :  { %v1293_v18 = vpop.f32.mrb[0].mxu1 }
 0x208   :  { %v1294_v19 = vpop.f32.mrb[1].mxu1 }
 0x209   :  { %v1295_v22 = vadd.f32 %v1294_v19, %v1293_v18  ;;  %v1296_v23 = vpop.f32.mrb[2].mxu1 }
 0x20a   :  { %v1297_v24 = vpop.f32.mrb[3].mxu1 }
 0x20b   :  { %v1787_v25 = vadd.f32 %v1295_v22, %v1675_v20  ;;  %v1298_v28 = vadd.f32 %v1297_v24, %v1296_v23 }
 0x20d   :  { %v1790_v29 = vadd.f32 %v1298_v28, %v1677_v21  ;;  %779 = vadd.xlane.f32.xlu0 %v1787_v25  ;;  %v843_v21 = vmul.f32 %v1787_v25, %v1787_v25 }
 0x20f   :  { %v1299_v30 = vpop.f32.mrb[4].mxu1  ;;  %v844_v31 = vmul.f32 %v1790_v29, %v1790_v29 }
 0x210   :  { %v1300_v32 = vpop.f32.mrb[5].mxu1 }
 0x211   :  { %v1301_v0 = vadd.f32 %v1300_v32, %v1299_v30  ;;  %877 = vadd.xlane.f32.xlu1 %v844_v31  ;;  %781 = vadd.xlane.f32.xlu0 %v1790_v29  ;;  %v1302_v33 = vpop.f32.mrb[6].mxu1 }
 0x212   :  { %v1303_v36 = vpop.f32.mrb[7].mxu1 }
 0x213   :  { %v1797_v20 = vadd.f32 %v1301_v0, %v1681_v26  ;;  %v1304_v37 = vadd.f32 %v1303_v36, %v1302_v33 }
 0x215   :  { %875 = vadd.xlane.f32.xlu0 %v843_v21  ;;  %783 = vadd.xlane.f32.xlu1 %v1797_v20  ;;  %v1803_v40 = vadd.f32 %v1304_v37, %v1683_v27  ;;  %v845_v46 = vmul.f32 %v1797_v20, %v1797_v20 }
 0x217   :  { %v1305_v43 = vpop.f32.mrb[8].mxu1  ;;  %v846_v1 = vmul.f32 %v1803_v40, %v1803_v40 }
 0x218   :  { %v1306_v49 = vpop.f32.mrb[9].mxu1 }
 0x219   :  { %v1307_v52 = vadd.f32 %v1306_v49, %v1305_v43  ;;  %785 = vadd.xlane.f32.xlu1 %v1803_v40  ;;  %879 = vadd.xlane.f32.xlu0 %v845_v46  ;;  %v1308_v26 = vpop.f32.mrb[10].mxu1 }
 0x21a   :  { %v1309_v55 = vpop.f32.mrb[11].mxu1 }
 0x21b   :  { %v1809_v58 = vadd.f32 %v1307_v52, %v1689_v34  ;;  %v1310_v61 = vadd.f32 %v1309_v55, %v1308_v26 }
 0x21d   :  { %881 = vadd.xlane.f32.xlu1 %v846_v1  ;;  %787 = vadd.xlane.f32.xlu0 %v1809_v58  ;;  %v1815_v27 = vadd.f32 %v1310_v61, %v1691_v35  ;;  %v847_v3 = vmul.f32 %v1809_v58, %v1809_v58 }
 0x21f   :  { %v1311_v2 = vpop.f32.mrb[12].mxu1  ;;  %v848_v17 = vmul.f32 %v1815_v27, %v1815_v27 }
 0x220   :  { %v1312_v4 = vpop.f32.mrb[13].mxu1 }
 0x221   :  { %v1313_v5 = vadd.f32 %v1312_v4, %v1311_v2  ;;  %789 = vadd.xlane.f32.xlu1 %v1815_v27  ;;  %883 = vadd.xlane.f32.xlu0 %v847_v3  ;;  %v1314_v34 = vpop.f32.mrb[14].mxu1 }
 0x222   :  { %v1315_v8 = vpop.f32.mrb[15].mxu1 }
 0x223   :  { %v1821_v11 = vadd.f32 %v1313_v5, %v1696_v38  ;;  %v1316_v14 = vadd.f32 %v1315_v8, %v1314_v34 }
 0x225   :  { %885 = vadd.xlane.f32.xlu1 %v848_v17  ;;  %791 = vadd.xlane.f32.xlu0 %v1821_v11  ;;  %v1827_v35 = vadd.f32 %v1316_v14, %v1698_v39  ;;  %v849_v19 = vmul.f32 %v1821_v11, %v1821_v11 }
 0x227   :  { %v1317_v18 = vpop.f32.mrb[16].mxu1  ;;  %v850_v31 = vmul.f32 %v1827_v35, %v1827_v35 }
 0x228   :  { %v1318_v22 = vpop.f32.mrb[17].mxu1 }
 0x229   :  { %v1319_v23 = vadd.f32 %v1318_v22, %v1317_v18  ;;  %793 = vadd.xlane.f32.xlu1 %v1827_v35  ;;  %887 = vadd.xlane.f32.xlu0 %v849_v19  ;;  %v1320_v38 = vpop.f32.mrb[18].mxu1 }
 0x22a   :  { %v1321_v24 = vpop.f32.mrb[19].mxu1 }
 0x22b   :  { %v1833_v28 = vadd.f32 %v1319_v23, %v1703_v41  ;;  %v1322_v30 = vadd.f32 %v1321_v24, %v1320_v38 }
 0x22d   :  { %889 = vadd.xlane.f32.xlu1 %v850_v31  ;;  %795 = vadd.xlane.f32.xlu0 %v1833_v28  ;;  %v1839_v39 = vadd.f32 %v1322_v30, %v1705_v42  ;;  %v851_v0 = vmul.f32 %v1833_v28, %v1833_v28 }
 0x22f   :  { %v1323_v32 = vpop.f32.mrb[20].mxu1  ;;  %v852_v46 = vmul.f32 %v1839_v39, %v1839_v39 }
 0x230   :  { %v1324_v33 = vpop.f32.mrb[21].mxu1 }
 0x231   :  { %v1325_v36 = vadd.f32 %v1324_v33, %v1323_v32  ;;  %797 = vadd.xlane.f32.xlu1 %v1839_v39  ;;  %891 = vadd.xlane.f32.xlu0 %v851_v0  ;;  %v1326_v41 = vpop.f32.mrb[22].mxu1 }
 0x232   :  { %v1327_v37 = vpop.f32.mrb[23].mxu1 }
 0x233   :  { %v1845_v21 = vadd.f32 %v1325_v36, %v1710_v44  ;;  %v1328_v43 = vadd.f32 %v1327_v37, %v1326_v41 }
 0x235   :  { %893 = vadd.xlane.f32.xlu1 %v852_v46  ;;  %799 = vadd.xlane.f32.xlu0 %v1845_v21  ;;  %v1851_v42 = vadd.f32 %v1328_v43, %v1712_v45  ;;  %v853_v52 = vmul.f32 %v1845_v21, %v1845_v21 }
 0x237   :  { %v1329_v49 = vpop.f32.mrb[24].mxu1  ;;  %v854_v3 = vmul.f32 %v1851_v42, %v1851_v42 }
 0x238   :  { %v1330_v26 = vpop.f32.mrb[25].mxu1 }
 0x239   :  { %v1331_v55 = vadd.f32 %v1330_v26, %v1329_v49  ;;  %801 = vadd.xlane.f32.xlu1 %v1851_v42  ;;  %895 = vadd.xlane.f32.xlu0 %v853_v52  ;;  %v1332_v44 = vpop.f32.mrb[26].mxu1 }
 0x23a   :  { %v1333_v61 = vpop.f32.mrb[27].mxu1 }
 0x23b   :  { %v1857_v1 = vadd.f32 %v1331_v55, %v1717_v47  ;;  %v1334_v2 = vadd.f32 %v1333_v61, %v1332_v44 }
 0x23d   :  { %897 = vadd.xlane.f32.xlu1 %v854_v3  ;;  %803 = vadd.xlane.f32.xlu0 %v1857_v1  ;;  %v1863_v45 = vadd.f32 %v1334_v2, %v1719_v48  ;;  %v855_v5 = vmul.f32 %v1857_v1, %v1857_v1 }
 0x23f   :  { %v1335_v4 = vpop.f32.mrb[28].mxu1  ;;  %v856_v19 = vmul.f32 %v1863_v45, %v1863_v45 }
 0x240   :  { %v1336_v34 = vpop.f32.mrb[29].mxu1 }
 0x241   :  { %v1337_v8 = vadd.f32 %v1336_v34, %v1335_v4  ;;  %805 = vadd.xlane.f32.xlu1 %v1863_v45  ;;  %899 = vadd.xlane.f32.xlu0 %v855_v5  ;;  %v1338_v47 = vpop.f32.mrb[30].mxu1 }
 0x242   :  { %v1339_v14 = vpop.f32.mrb[31].mxu1 }
 0x243   :  { %v1869_v17 = vadd.f32 %v1337_v8, %v1724_v50  ;;  %v1340_v18 = vadd.f32 %v1339_v14, %v1338_v47 }
 0x245   :  { %901 = vadd.xlane.f32.xlu1 %v856_v19  ;;  %807 = vadd.xlane.f32.xlu0 %v1869_v17  ;;  %v1875_v48 = vadd.f32 %v1340_v18, %v1726_v51  ;;  %v857_v23 = vmul.f32 %v1869_v17, %v1869_v17 }
 0x247   :  { %v1341_v22 = vpop.f32.mrb[32].mxu1  ;;  %v858_v0 = vmul.f32 %v1875_v48, %v1875_v48 }
 0x248   :  { %v1342_v38 = vpop.f32.mrb[33].mxu1 }
 0x249   :  { %v1343_v24 = vadd.f32 %v1342_v38, %v1341_v22  ;;  %809 = vadd.xlane.f32.xlu1 %v1875_v48  ;;  %903 = vadd.xlane.f32.xlu0 %v857_v23  ;;  %v1344_v50 = vpop.f32.mrb[34].mxu1 }
 0x24a   :  { %v1345_v30 = vpop.f32.mrb[35].mxu1 }
 0x24b   :  { %v1881_v31 = vadd.f32 %v1343_v24, %v1731_v53  ;;  %v1346_v32 = vadd.f32 %v1345_v30, %v1344_v50 }
 0x24d   :  { %905 = vadd.xlane.f32.xlu1 %v858_v0  ;;  %811 = vadd.xlane.f32.xlu0 %v1881_v31  ;;  %v1887_v51 = vadd.f32 %v1346_v32, %v1733_v54  ;;  %v859_v36 = vmul.f32 %v1881_v31, %v1881_v31 }
 0x24f   :  { %v1347_v33 = vpop.f32.mrb[36].mxu1  ;;  %v860_v52 = vmul.f32 %v1887_v51, %v1887_v51 }
 0x250   :  { %v1348_v41 = vpop.f32.mrb[37].mxu1 }
 0x251   :  { %v1349_v37 = vadd.f32 %v1348_v41, %v1347_v33  ;;  %813 = vadd.xlane.f32.xlu1 %v1887_v51  ;;  %907 = vadd.xlane.f32.xlu0 %v859_v36  ;;  %v1350_v53 = vpop.f32.mrb[38].mxu1 }
 0x252   :  { %v1351_v43 = vpop.f32.mrb[39].mxu1 }
 0x253   :  { %v1893_v46 = vadd.f32 %v1349_v37, %v1738_v56  ;;  %v1352_v49 = vadd.f32 %v1351_v43, %v1350_v53 }
 0x255   :  { %909 = vadd.xlane.f32.xlu1 %v860_v52  ;;  %815 = vadd.xlane.f32.xlu0 %v1893_v46  ;;  %v1899_v54 = vadd.f32 %v1352_v49, %v1740_v57  ;;  %v861_v55 = vmul.f32 %v1893_v46, %v1893_v46 }
 0x257   :  { %v1353_v26 = vpop.f32.mrb[40].mxu1  ;;  %v862_v5 = vmul.f32 %v1899_v54, %v1899_v54 }
 0x258   :  { %v1354_v44 = vpop.f32.mrb[41].mxu1 }
 0x259   :  { %v1355_v61 = vadd.f32 %v1354_v44, %v1353_v26  ;;  %817 = vadd.xlane.f32.xlu1 %v1899_v54  ;;  %911 = vadd.xlane.f32.xlu0 %v861_v55  ;;  %v1356_v56 = vpop.f32.mrb[42].mxu1 }
 0x25a   :  { %v1357_v2 = vpop.f32.mrb[43].mxu1 }
 0x25b   :  { %v1905_v3 = vadd.f32 %v1355_v61, %v1745_v59  ;;  %v1358_v4 = vadd.f32 %v1357_v2, %v1356_v56 }
 0x25d   :  { %913 = vadd.xlane.f32.xlu1 %v862_v5  ;;  %819 = vadd.xlane.f32.xlu0 %v1905_v3  ;;  %v1911_v57 = vadd.f32 %v1358_v4, %v1747_v60  ;;  %v863_v8 = vmul.f32 %v1905_v3, %v1905_v3 }
 0x25f   :  { %v1359_v34 = vpop.f32.mrb[44].mxu1  ;;  %v864_v23 = vmul.f32 %v1911_v57, %v1911_v57 }
 0x260   :  { %v1360_v47 = vpop.f32.mrb[45].mxu1 }
 0x261   :  { %v1361_v14 = vadd.f32 %v1360_v47, %v1359_v34  ;;  %821 = vadd.xlane.f32.xlu1 %v1911_v57  ;;  %915 = vadd.xlane.f32.xlu0 %v863_v8  ;;  %v1362_v59 = vpop.f32.mrb[46].mxu1 }
 0x262   :  { %v1363_v18 = vpop.f32.mrb[47].mxu1 }
 0x263   :  { %v1917_v19 = vadd.f32 %v1361_v14, %v1752_v62  ;;  %v1364_v22 = vadd.f32 %v1363_v18, %v1362_v59 }
 0x265   :  { %917 = vadd.xlane.f32.xlu1 %v864_v23  ;;  %823 = vadd.xlane.f32.xlu0 %v1917_v19  ;;  %v1923_v60 = vadd.f32 %v1364_v22, %v1754_v63  ;;  %v865_v24 = vmul.f32 %v1917_v19, %v1917_v19 }
 0x267   :  { %v1365_v38 = vpop.f32.mrb[48].mxu1  ;;  %v866_v36 = vmul.f32 %v1923_v60, %v1923_v60 }
 0x268   :  { %v1366_v50 = vpop.f32.mrb[49].mxu1 }
 0x269   :  { %v1367_v30 = vadd.f32 %v1366_v50, %v1365_v38  ;;  %825 = vadd.xlane.f32.xlu1 %v1923_v60  ;;  %919 = vadd.xlane.f32.xlu0 %v865_v24  ;;  %v1368_v62 = vpop.f32.mrb[50].mxu1 }
 0x26a   :  { %v1369_v32 = vpop.f32.mrb[51].mxu1 }
 0x26b   :  { %v1929_v0 = vadd.f32 %v1367_v30, %v1759_v6  ;;  %v1370_v33 = vadd.f32 %v1369_v32, %v1368_v62 }
 0x26d   :  { %921 = vadd.xlane.f32.xlu1 %v866_v36  ;;  %827 = vadd.xlane.f32.xlu0 %v1929_v0  ;;  %v1935_v63 = vadd.f32 %v1370_v33, %v1761_v7  ;;  %v867_v37 = vmul.f32 %v1929_v0, %v1929_v0 }
 0x26f   :  { %v1371_v41 = vpop.f32.mrb[52].mxu1  ;;  %v868_v55 = vmul.f32 %v1935_v63, %v1935_v63 }
 0x270   :  { %v1372_v53 = vpop.f32.mrb[53].mxu1 }
 0x271   :  { %v1373_v43 = vadd.f32 %v1372_v53, %v1371_v41  ;;  %829 = vadd.xlane.f32.xlu1 %v1935_v63  ;;  %923 = vadd.xlane.f32.xlu0 %v867_v37  ;;  %v1374_v6 = vpop.f32.mrb[54].mxu1 }
 0x272   :  { %v1375_v49 = vpop.f32.mrb[55].mxu1 }
 0x273   :  { %v1941_v52 = vadd.f32 %v1373_v43, %v1766_v9  ;;  %v1376_v26 = vadd.f32 %v1375_v49, %v1374_v6 }
 0x275   :  { %925 = vadd.xlane.f32.xlu1 %v868_v55  ;;  %831 = vadd.xlane.f32.xlu0 %v1941_v52  ;;  %v1947_v7 = vadd.f32 %v1376_v26, %v1768_v10  ;;  %v869_v61 = vmul.f32 %v1941_v52, %v1941_v52 }
 0x277   :  { %v1377_v44 = vpop.f32.mrb[56].mxu1  ;;  %v870_v8 = vmul.f32 %v1947_v7, %v1947_v7 }
 0x278   :  { %v1378_v56 = vpop.f32.mrb[57].mxu1 }
 0x279   :  { %v1379_v2 = vadd.f32 %v1378_v56, %v1377_v44  ;;  %833 = vadd.xlane.f32.xlu1 %v1947_v7  ;;  %927 = vadd.xlane.f32.xlu0 %v869_v61  ;;  %v1380_v9 = vpop.f32.mrb[58].mxu1 }
 0x27a   :  { %v1381_v4 = vpop.f32.mrb[59].mxu1 }
 0x27b   :  { %v1953_v5 = vadd.f32 %v1379_v2, %v1773_v12  ;;  %v1382_v34 = vadd.f32 %v1381_v4, %v1380_v9 }
 0x27d   :  { %929 = vadd.xlane.f32.xlu1 %v870_v8  ;;  %835 = vadd.xlane.f32.xlu0 %v1953_v5  ;;  %v1959_v10 = vadd.f32 %v1382_v34, %v1775_v13  ;;  %v871_v14 = vmul.f32 %v1953_v5, %v1953_v5 }
 0x27f   :  { %v1383_v47 = vpop.f32.mrb[60].mxu1  ;;  %v872_v24 = vmul.f32 %v1959_v10, %v1959_v10 }
 0x280   :  { %v1384_v59 = vpop.f32.mrb[61].mxu1 }
 0x281   :  { %v1385_v18 = vadd.f32 %v1384_v59, %v1383_v47  ;;  %837 = vadd.xlane.f32.xlu1 %v1959_v10  ;;  %931 = vadd.xlane.f32.xlu0 %v871_v14  ;;  %v1386_v12 = vpop.f32.mrb[62].mxu1 }
 0x282   :  { %v1387_v22 = vpop.f32.mrb[63].mxu1 }
 0x283   :  { %v1965_v23 = vadd.f32 %v1385_v18, %v1780_v15  ;;  %v1388_v38 = vadd.f32 %v1387_v22, %v1386_v12 }
 0x285   :  { %933 = vadd.xlane.f32.xlu1 %v872_v24  ;;  %839 = vadd.xlane.f32.xlu0 %v1965_v23  ;;  %v1971_v13 = vadd.f32 %v1388_v38, %v1782_v16  ;;  %v873_v50 = vmul.f32 %v1965_v23, %v1965_v23 }
 0x287   :  { %v874_v15 = vmul.f32 %v1971_v13, %v1971_v13 }
 0x289   :  { %841 = vadd.xlane.f32.xlu1 %v1971_v13  ;;  %935 = vadd.xlane.f32.xlu0 %v873_v50 }
 0x28d   :  { %937 = vadd.xlane.f32.xlu1 %v874_v15 }
 0x29a   :  { %v780_v30 = vpop.xlane.xlu0 %779 }
 0x29b   :  { %v939_v33 = vmul.f32 0.0078125, %v780_v30 }
 0x29d   :  { %v1003_v43 = vmul.f32 %v939_v33, %v939_v33 }
 0x29e   :  { %v878_v62 = vpop.xlane.xlu1 %877  ;;  %v782_v32 = vpop.xlane.xlu0 %781 }
 0x29f   :  { %v940_v36 = vmul.f32 0.0078125, %v782_v32  ;;  %v972_v41 = vmul.f32 0.0078125, %v878_v62 }
 0x2a1   :  { %v1004_v37 = vmul.f32 %v940_v36, %v940_v36 }
 0x2a2   :  { %v876_v53 = vpop.xlane.xlu0 %875  ;;  %v784_v16 = vpop.xlane.xlu1 %783 }
 0x2a3   :  { %v1036_v6 = vsub.f32 %v972_v41, %v1004_v37  ;;  %v971_v49 = vmul.f32 0.0078125, %v876_v53  ;;  %v941_v26 = vmul.f32 0.0078125, %v784_v16  ;;  %v1068_v41 = vsub.f32 %v1790_v29, %v940_v36 }
 0x2a4   :  { %v1067_v16 = vsub.f32 %v1787_v25, %v939_v33 }
 0x2a5   :  { %v1100_v55 = vadd.f32 1e-05, %v1036_v6  ;;  %v1035_v44 = vsub.f32 %v971_v49, %v1003_v43  ;;  %v1005_v61 = vmul.f32 %v941_v26, %v941_v26  ;;  %v1069_v36 = vsub.f32 %v1797_v20, %v941_v26 }
 0x2a6   :  { %v786_v56 = vpop.xlane.xlu1 %785  ;;  %v880_v2 = vpop.xlane.xlu0 %879 }
 0x2a7   :  { %1438 = vrsqrt.f32 %v1100_v55  ;;  %v1099_v9 = vadd.f32 1e-05, %v1035_v44  ;;  %v942_v4 = vmul.f32 0.0078125, %v786_v56  ;;  %v973_v34 = vmul.f32 0.0078125, %v880_v2 }
 0x2a9   :  { %1440 = vrsqrt.f32 %v1099_v9  ;;  %v1037_v8 = vsub.f32 %v973_v34, %v1005_v61  ;;  %v1006_v59 = vmul.f32 %v942_v4, %v942_v4 }
 0x2aa   :  { %v882_v47 = vpop.xlane.xlu1 %881  ;;  %v788_v14 = vpop.xlane.xlu0 %787 }
 0x2ab   :  { %v1101_v18 = vadd.f32 1e-05, %v1037_v8  ;;  %v974_v12 = vmul.f32 0.0078125, %v882_v47  ;;  %v943_v22 = vmul.f32 0.0078125, %v788_v14 }
 0x2ad   :  { %1442 = vrsqrt.f32 %v1101_v18  ;;  %v1038_v38 = vsub.f32 %v974_v12, %v1006_v59  ;;  %v1007_v30 = vmul.f32 %v943_v22, %v943_v22 }
 0x2ae   :  { %v790_v24 = vpop.xlane.xlu1 %789  ;;  %v884_v50 = vpop.xlane.xlu0 %883 }
 0x2af   :  { %v1102_v15 = vadd.f32 1e-05, %v1038_v38  ;;  %v1978_v62 = vmul.f32 0.0078125, %v790_v24  ;;  %v975_v32 = vmul.f32 0.0078125, %v884_v50  ;;  %v1070_v38 = vsub.f32 %v1803_v40, %v942_v4 }
 0x2b1   :  { %v1439_v37 = vpop.eup %1438  ;;  %1444 = vrsqrt.f32 %v1102_v15  ;;  %v1039_v53 = vsub.f32 %v975_v32, %v1007_v30  ;;  %v1008_v44 = vmul.f32 %v1978_v62, %v1978_v62 }
 0x2b2   :  { %v1164_v43 = vmul.f32 %v1439_v37, %v1068_v41  ;;  %v886_v6 = vpop.xlane.xlu1 %885  ;;  %v792_v49 = vpop.xlane.xlu0 %791 }
 0x2b3   :  { %v1441_v55 = vpop.eup %1440  ;;  %v1103_v61 = vadd.f32 1e-05, %v1039_v53  ;;  %v976_v56 = vmul.f32 0.0078125, %v886_v6  ;;  %v1984_v2 = vmul.f32 0.0078125, %v792_v49  ;;  %v1071_v53 = vsub.f32 %v1809_v58, %v943_v22 }
 0x2b4   :  { %1196 = vst [vmem:[#allocation8 + $0x8] sm:$0xff] %v1164_v43  ;;  %v1163_v9 = vmul.f32 %v1441_v55, %v1067_v16 }
 0x2b5   :  { %1446 = vrsqrt.f32 %v1103_v61  ;;  %v1040_v29 = vsub.f32 %v976_v56, %v1008_v44  ;;  %v1009_v47 = vmul.f32 %v1984_v2, %v1984_v2  ;;  %v1072_v56 = vsub.f32 %v1815_v27, %v1978_v62 }
 0x2b6   :  { %1195 = vst [vmem:[#allocation8] sm:$0xff] %v1163_v9  ;;  %v794_v34 = vpop.xlane.xlu1 %793  ;;  %v888_v25 = vpop.xlane.xlu0 %887 }
 0x2b7   :  { %v1443_v33 = vpop.eup %1442  ;;  %v1104_v8 = vadd.f32 1e-05, %v1040_v29  ;;  %v1989_v14 = vmul.f32 0.0078125, %v794_v34  ;;  %v977_v59 = vmul.f32 0.0078125, %v888_v25 }
 0x2b8   :  { %v1165_v18 = vmul.f32 %v1443_v33, %v1069_v36 }
 0x2b9   :  { %1448 = vrsqrt.f32 %v1104_v8  ;;  %v1041_v12 = vsub.f32 %v977_v59, %v1009_v47  ;;  %v1010_v20 = vmul.f32 %v1989_v14, %v1989_v14  ;;  %v1073_v47 = vsub.f32 %v1821_v11, %v1984_v2 }
 0x2ba   :  { %1197 = vst [vmem:[#allocation8 + $0x10] sm:$0xff] %v1165_v18  ;;  %v890_v24 = vpop.xlane.xlu1 %889  ;;  %v796_v50 = vpop.xlane.xlu0 %795 }
 0x2bb   :  { %v1445_v15 = vpop.eup %1444  ;;  %v1105_v26 = vadd.f32 1e-05, %v1041_v12  ;;  %v978_v30 = vmul.f32 0.0078125, %v890_v24  ;;  %v947_v32 = vmul.f32 0.0078125, %v796_v50 }
 0x2bc   :  { %v1166_v41 = vmul.f32 %v1445_v15, %v1070_v38 }
 0x2bd   :  { %1450 = vrsqrt.f32 %v1105_v26  ;;  %v1042_v37 = vsub.f32 %v978_v30, %v1010_v20  ;;  %v1011_v4 = vmul.f32 %v947_v32, %v947_v32  ;;  %v1074_v20 = vsub.f32 %v1827_v35, %v1989_v14 }
 0x2be   :  { %1198 = vst [vmem:[#allocation8 + $0x18] sm:$0xff] %v1166_v41  ;;  %v798_v16 = vpop.xlane.xlu1 %797  ;;  %v892_v43 = vpop.xlane.xlu0 %891 }
 0x2bf   :  { %v1447_v6 = vpop.eup %1446  ;;  %v1106_v40 = vadd.f32 1e-05, %v1042_v37  ;;  %v1995_v49 = vmul.f32 0.0078125, %v798_v16  ;;  %v979_v55 = vmul.f32 0.0078125, %v892_v43 }
 0x2c0   :  { %v1167_v44 = vmul.f32 %v1447_v6, %v1071_v53  ;;  %v1075_v6 = vsub.f32 %v1833_v28, %v947_v32 }
 0x2c1   :  { %1452 = vrsqrt.f32 %v1106_v40  ;;  %v1043_v61 = vsub.f32 %v979_v55, %v1011_v4  ;;  %v1012_v58 = vmul.f32 %v1995_v49, %v1995_v49 }
 0x2c2   :  { %1199 = vst [vmem:[#allocation8 + $0x20] sm:$0xff] %v1167_v44  ;;  %v894_v9 = vpop.xlane.xlu1 %893  ;;  %v800_v29 = vpop.xlane.xlu0 %799 }
 0x2c3   :  { %v1449_v36 = vpop.eup %1448  ;;  %v1107_v22 = vadd.f32 1e-05, %v1043_v61  ;;  %v980_v34 = vmul.f32 0.0078125, %v894_v9  ;;  %v949_v25 = vmul.f32 0.0078125, %v800_v29  ;;  %v1076_v29 = vsub.f32 %v1839_v39, %v1995_v49 }
 0x2c4   :  { %v1168_v33 = vmul.f32 %v1449_v36, %v1072_v56 }
 0x2c5   :  { %1454 = vrsqrt.f32 %v1107_v22  ;;  %v1044_v8 = vsub.f32 %v980_v34, %v1012_v58  ;;  %v1013_v12 = vmul.f32 %v949_v25, %v949_v25 }
 0x2c6   :  { %1200 = vst [vmem:[#allocation8 + $0x28] sm:$0xff] %v1168_v33  ;;  %v802_v59 = vpop.xlane.xlu1 %801  ;;  %v896_v18 = vpop.xlane.xlu0 %895 }
 0x2c7   :  { %v1451_v27 = vpop.eup %1450  ;;  %v1108_v62 = vadd.f32 1e-05, %v1044_v8  ;;  %v2003_v38 = vmul.f32 0.0078125, %v802_v59  ;;  %v981_v24 = vmul.f32 0.0078125, %v896_v18  ;;  %v1077_v59 = vsub.f32 %v1845_v21, %v949_v25 }
 0x2c8   :  { %v1169_v50 = vmul.f32 %v1451_v27, %v1073_v47 }
 0x2c9   :  { %1456 = vrsqrt.f32 %v1108_v62  ;;  %v1045_v15 = vsub.f32 %v981_v24, %v1013_v12  ;;  %v1014_v11 = vmul.f32 %v2003_v38, %v2003_v38 }
 0x2ca   :  { %1201 = vst [vmem:[#allocation8 + $0x30] sm:$0xff] %v1169_v50  ;;  %v898_v26 = vpop.xlane.xlu1 %897  ;;  %v804_v30 = vpop.xlane.xlu0 %803 }
 0x2cb   :  { %v1453_v41 = vpop.eup %1452  ;;  %v1109_v2 = vadd.f32 1e-05, %v1045_v15  ;;  %v982_v37 = vmul.f32 0.0078125, %v898_v26  ;;  %v951_v53 = vmul.f32 0.0078125, %v804_v30 }
 0x2cc   :  { %v1170_v16 = vmul.f32 %v1453_v41, %v1074_v20  ;;  %v1078_v20 = vsub.f32 %v1851_v42, %v2003_v38 }
 0x2cd   :  { %1458 = vrsqrt.f32 %v1109_v2  ;;  %v1046_v43 = vsub.f32 %v982_v37, %v1014_v11  ;;  %v1015_v14 = vmul.f32 %v951_v53, %v951_v53 }
 0x2ce   :  { %1202 = vst [vmem:[#allocation8 + $0x38] sm:$0xff] %v1170_v16  ;;  %v806_v40 = vpop.xlane.xlu1 %805  ;;  %v900_v4 = vpop.xlane.xlu0 %899 }
 0x2cf   :  { %v1455_v55 = vpop.eup %1454  ;;  %v1110_v35 = vadd.f32 1e-05, %v1046_v43  ;;  %v2010_v44 = vmul.f32 0.0078125, %v806_v40  ;;  %v983_v61 = vmul.f32 0.0078125, %v900_v4  ;;  %v1079_v43 = vsub.f32 %v1857_v1, %v951_v53 }
 0x2d0   :  { %v1171_v56 = vmul.f32 %v1455_v55, %v1075_v6 }
 0x2d1   :  { %1460 = vrsqrt.f32 %v1110_v35  ;;  %v1047_v9 = vsub.f32 %v983_v61, %v1015_v14  ;;  %v1016_v28 = vmul.f32 %v2010_v44, %v2010_v44 }
 0x2d2   :  { %1203 = vst [vmem:[#allocation8 + $0x40] sm:$0xff] %v1171_v56  ;;  %v902_v36 = vpop.xlane.xlu1 %901  ;;  %v808_v58 = vpop.xlane.xlu0 %807  ;;  %v1080_v56 = vsub.f32 %v1863_v45, %v2010_v44 }
 0x2d3   :  { %v1457_v22 = vpop.eup %1456  ;;  %v1111_v32 = vadd.f32 1e-05, %v1047_v9  ;;  %v984_v34 = vmul.f32 0.0078125, %v902_v36  ;;  %v953_v33 = vmul.f32 0.0078125, %v808_v58 }
 0x2d4   :  { %v1172_v8 = vmul.f32 %v1457_v22, %v1076_v29 }
 0x2d5   :  { %1462 = vrsqrt.f32 %v1111_v32  ;;  %v1048_v47 = vsub.f32 %v984_v34, %v1016_v28  ;;  %v1017_v49 = vmul.f32 %v953_v33, %v953_v33  ;;  %v1081_v34 = vsub.f32 %v1869_v17, %v953_v33 }
 0x2d6   :  { %1204 = vst [vmem:[#allocation8 + $0x48] sm:$0xff] %v1172_v8  ;;  %v810_v18 = vpop.xlane.xlu1 %809  ;;  %v904_v27 = vpop.xlane.xlu0 %903 }
 0x2d7   :  { %v1459_v62 = vpop.eup %1458  ;;  %v1112_v39 = vadd.f32 1e-05, %v1048_v47  ;;  %v2017_v12 = vmul.f32 0.0078125, %v810_v18  ;;  %v985_v24 = vmul.f32 0.0078125, %v904_v27 }
 0x2d8   :  { %v1173_v50 = vmul.f32 %v1459_v62, %v1077_v59 }
 0x2d9   :  { %1464 = vrsqrt.f32 %v1112_v39  ;;  %v1049_v15 = vsub.f32 %v985_v24, %v1017_v49  ;;  %v1018_v21 = vmul.f32 %v2017_v12, %v2017_v12  ;;  %v1082_v49 = vsub.f32 %v1875_v48, %v2017_v12 }
 0x2da   :  { %1205 = vst [vmem:[#allocation8 + $0x50] sm:$0xff] %v1173_v50  ;;  %v906_v26 = vpop.xlane.xlu1 %905  ;;  %v812_v30 = vpop.xlane.xlu0 %811 }
 0x2db   :  { %v1461_v41 = vpop.eup %1460  ;;  %v1113_v25 = vadd.f32 1e-05, %v1049_v15  ;;  %v986_v11 = vmul.f32 0.0078125, %v906_v26  ;;  %v955_v2 = vmul.f32 0.0078125, %v812_v30 }
 0x2dc   :  { %v1174_v37 = vmul.f32 %v1461_v41, %v1078_v20 }
 0x2dd   :  { %1466 = vrsqrt.f32 %v1113_v25  ;;  %v1050_v16 = vsub.f32 %v986_v11, %v1018_v21  ;;  %v1019_v38 = vmul.f32 %v955_v2, %v955_v2  ;;  %v1083_v21 = vsub.f32 %v1881_v31, %v955_v2 }
 0x2de   :  { %1206 = vst [vmem:[#allocation8 + $0x58] sm:$0xff] %v1174_v37  ;;  %v814_v6 = vpop.xlane.xlu1 %813  ;;  %v908_v40 = vpop.xlane.xlu0 %907 }
 0x2df   :  { %v1463_v4 = vpop.eup %1462  ;;  %v1114_v42 = vadd.f32 1e-05, %v1050_v16  ;;  %v2024_v55 = vmul.f32 0.0078125, %v814_v6  ;;  %v987_v35 = vmul.f32 0.0078125, %v908_v40 }
 0x2e0   :  { %v1175_v14 = vmul.f32 %v1463_v4, %v1079_v43 }
 0x2e1   :  { %1468 = vrsqrt.f32 %v1114_v42  ;;  %v1051_v61 = vsub.f32 %v987_v35, %v1019_v38  ;;  %v1020_v1 = vmul.f32 %v2024_v55, %v2024_v55  ;;  %v1084_v4 = vsub.f32 %v1887_v51, %v2024_v55 }
 0x2e2   :  { %1207 = vst [vmem:[#allocation8 + $0x60] sm:$0xff] %v1175_v14  ;;  %v910_v9 = vpop.xlane.xlu1 %909  ;;  %v816_v29 = vpop.xlane.xlu0 %815 }
 0x2e3   :  { %v1465_v36 = vpop.eup %1464  ;;  %v1115_v53 = vadd.f32 1e-05, %v1051_v61  ;;  %v988_v58 = vmul.f32 0.0078125, %v910_v9  ;;  %v957_v22 = vmul.f32 0.0078125, %v816_v29 }
 0x2e4   :  { %v1176_v28 = vmul.f32 %v1465_v36, %v1080_v56 }
 0x2e5   :  { %1470 = vrsqrt.f32 %v1115_v53  ;;  %v1052_v32 = vsub.f32 %v988_v58, %v1020_v1  ;;  %v1021_v44 = vmul.f32 %v957_v22, %v957_v22  ;;  %v1085_v29 = vsub.f32 %v1893_v46, %v957_v22 }
 0x2e6   :  { %1208 = vst [vmem:[#allocation8 + $0x68] sm:$0xff] %v1176_v28  ;;  %v818_v8 = vpop.xlane.xlu1 %817  ;;  %v912_v47 = vpop.xlane.xlu0 %911 }
 0x2e7   :  { %v1467_v59 = vpop.eup %1466  ;;  %v1116_v45 = vadd.f32 1e-05, %v1052_v32  ;;  %v2031_v18 = vmul.f32 0.0078125, %v818_v8  ;;  %v989_v27 = vmul.f32 0.0078125, %v912_v47 }
 0x2e8   :  { %v1177_v62 = vmul.f32 %v1467_v59, %v1081_v34 }
 0x2e9   :  { %1472 = vrsqrt.f32 %v1116_v45  ;;  %v1053_v39 = vsub.f32 %v989_v27, %v1021_v44  ;;  %v1022_v17 = vmul.f32 %v2031_v18, %v2031_v18  ;;  %v1086_v8 = vsub.f32 %v1899_v54, %v2031_v18 }
 0x2ea   :  { %1209 = vst [vmem:[#allocation8 + $0x70] sm:$0xff] %v1177_v62  ;;  %v914_v24 = vpop.xlane.xlu1 %913  ;;  %v820_v50 = vpop.xlane.xlu0 %819 }
 0x2eb   :  { %v1469_v15 = vpop.eup %1468  ;;  %v1117_v33 = vadd.f32 1e-05, %v1053_v39  ;;  %v990_v20 = vmul.f32 0.0078125, %v914_v24  ;;  %v959_v26 = vmul.f32 0.0078125, %v820_v50 }
 0x2ec   :  { %v1178_v30 = vmul.f32 %v1469_v15, %v1082_v49 }
 0x2ed   :  { %1474 = vrsqrt.f32 %v1117_v33  ;;  %v1054_v41 = vsub.f32 %v990_v20, %v1022_v17  ;;  %v1023_v12 = vmul.f32 %v959_v26, %v959_v26  ;;  %v1087_v49 = vsub.f32 %v1905_v3, %v959_v26 }
 0x2ee   :  { %1210 = vst [vmem:[#allocation8 + $0x78] sm:$0xff] %v1178_v30  ;;  %v822_v25 = vpop.xlane.xlu1 %821  ;;  %v916_v11 = vpop.xlane.xlu0 %915 }
 0x2ef   :  { %v1471_v37 = vpop.eup %1470  ;;  %v1118_v48 = vadd.f32 1e-05, %v1054_v41  ;;  %v2038_v16 = vmul.f32 0.0078125, %v822_v25  ;;  %v991_v43 = vmul.f32 0.0078125, %v916_v11 }
 0x2f0   :  { %v1179_v6 = vmul.f32 %v1471_v37, %v1083_v21 }
 0x2f1   :  { %1476 = vrsqrt.f32 %v1118_v48  ;;  %v1055_v40 = vsub.f32 %v991_v43, %v1023_v12  ;;  %v1024_v31 = vmul.f32 %v2038_v16, %v2038_v16  ;;  %v1088_v41 = vsub.f32 %v1911_v57, %v2038_v16 }
 0x2f2   :  { %1211 = vst [vmem:[#allocation8 + $0x80] sm:$0xff] %v1179_v6  ;;  %v918_v42 = vpop.xlane.xlu1 %917  ;;  %v824_v38 = vpop.xlane.xlu0 %823 }
 0x2f3   :  { %v1473_v35 = vpop.eup %1472  ;;  %v1119_v2 = vadd.f32 1e-05, %v1055_v40  ;;  %v992_v14 = vmul.f32 0.0078125, %v918_v42  ;;  %v961_v61 = vmul.f32 0.0078125, %v824_v38 }
 0x2f4   :  { %v1180_v56 = vmul.f32 %v1473_v35, %v1084_v4 }
 0x2f5   :  { %1478 = vrsqrt.f32 %v1119_v2  ;;  %v1056_v9 = vsub.f32 %v992_v14, %v1024_v31  ;;  %v1025_v55 = vmul.f32 %v961_v61, %v961_v61  ;;  %v1089_v6 = vsub.f32 %v1917_v19, %v961_v61 }
 0x2f6   :  { %1212 = vst [vmem:[#allocation8 + $0x88] sm:$0xff] %v1180_v56  ;;  %v826_v36 = vpop.xlane.xlu1 %825  ;;  %v920_v1 = vpop.xlane.xlu0 %919 }
 0x2f7   :  { %v1475_v53 = vpop.eup %1474  ;;  %v1120_v51 = vadd.f32 1e-05, %v1056_v9  ;;  %v2045_v58 = vmul.f32 0.0078125, %v826_v36  ;;  %v993_v28 = vmul.f32 0.0078125, %v920_v1 }
 0x2f8   :  { %v1181_v32 = vmul.f32 %v1475_v53, %v1085_v29 }
 0x2f9   :  { %1480 = vrsqrt.f32 %v1120_v51  ;;  %v1057_v34 = vsub.f32 %v993_v28, %v1025_v55  ;;  %v1026_v46 = vmul.f32 %v2045_v58, %v2045_v58  ;;  %v1090_v14 = vsub.f32 %v1923_v60, %v2045_v58 }
 0x2fa   :  { %1213 = vst [vmem:[#allocation8 + $0x90] sm:$0xff] %v1181_v32  ;;  %v922_v47 = vpop.xlane.xlu1 %921  ;;  %v828_v59 = vpop.xlane.xlu0 %827 }
 0x2fb   :  { %v1477_v45 = vpop.eup %1476  ;;  %v1121_v22 = vadd.f32 1e-05, %v1057_v34  ;;  %v994_v44 = vmul.f32 0.0078125, %v922_v47  ;;  %v963_v27 = vmul.f32 0.0078125, %v828_v59 }
 0x2fc   :  { %v1182_v62 = vmul.f32 %v1477_v45, %v1086_v8 }
 0x2fd   :  { %1482 = vrsqrt.f32 %v1121_v22  ;;  %v1058_v39 = vsub.f32 %v994_v44, %v1026_v46  ;;  %v1027_v18 = vmul.f32 %v963_v27, %v963_v27  ;;  %v1091_v55 = vsub.f32 %v1929_v0, %v963_v27 }
 0x2fe   :  { %1214 = vst [vmem:[#allocation8 + $0x98] sm:$0xff] %v1182_v62  ;;  %v830_v24 = vpop.xlane.xlu1 %829  ;;  %v924_v50 = vpop.xlane.xlu0 %923 }
 0x2ff   :  { %v1479_v15 = vpop.eup %1478  ;;  %v1122_v54 = vadd.f32 1e-05, %v1058_v39  ;;  %v2052_v17 = vmul.f32 0.0078125, %v830_v24  ;;  %v995_v33 = vmul.f32 0.0078125, %v924_v50 }
 0x300   :  { %v1183_v20 = vmul.f32 %v1479_v15, %v1087_v49 }
 0x301   :  { %1484 = vrsqrt.f32 %v1122_v54  ;;  %v1059_v30 = vsub.f32 %v995_v33, %v1027_v18  ;;  %v1028_v3 = vmul.f32 %v2052_v17, %v2052_v17  ;;  %v1092_v46 = vsub.f32 %v1935_v63, %v2052_v17 }
 0x302   :  { %1215 = vst [vmem:[#allocation8 + $0xa0] sm:$0xff] %v1183_v20  ;;  %v926_v21 = vpop.xlane.xlu1 %925  ;;  %v832_v25 = vpop.xlane.xlu0 %831 }
 0x303   :  { %v1481_v11 = vpop.eup %1480  ;;  %v1123_v26 = vadd.f32 1e-05, %v1059_v30  ;;  %v996_v37 = vmul.f32 0.0078125, %v926_v21  ;;  %v965_v48 = vmul.f32 0.0078125, %v832_v25 }
 0x304   :  { %v1184_v12 = vmul.f32 %v1481_v11, %v1088_v41 }
 0x305   :  { %1486 = vrsqrt.f32 %v1123_v26  ;;  %v1060_v43 = vsub.f32 %v996_v37, %v1028_v3  ;;  %v1029_v16 = vmul.f32 %v965_v48, %v965_v48  ;;  %v1093_v15 = vsub.f32 %v1941_v52, %v965_v48 }
 0x306   :  { %1216 = vst [vmem:[#allocation8 + $0xa8] sm:$0xff] %v1184_v12  ;;  %v834_v40 = vpop.xlane.xlu1 %833  ;;  %v928_v4 = vpop.xlane.xlu0 %927 }
 0x307   :  { %v1483_v42 = vpop.eup %1482  ;;  %v1124_v57 = vadd.f32 1e-05, %v1060_v43  ;;  %v966_v38 = vmul.f32 0.0078125, %v834_v40  ;;  %v997_v35 = vmul.f32 0.0078125, %v928_v4 }
 0x308   :  { %v1185_v31 = vmul.f32 %v1483_v42, %v1089_v6 }
 0x309   :  { %1488 = vrsqrt.f32 %v1124_v57  ;;  %v1061_v2 = vsub.f32 %v997_v35, %v1029_v16  ;;  %v1030_v36 = vmul.f32 %v966_v38, %v966_v38  ;;  %v1094_v25 = vsub.f32 %v1947_v7, %v966_v38 }
 0x30a   :  { %1217 = vst [vmem:[#allocation8 + $0xb0] sm:$0xff] %v1185_v31  ;;  %v930_v56 = vpop.xlane.xlu1 %929  ;;  %v836_v9 = vpop.xlane.xlu0 %835 }
 0x30b   :  { %v1485_v29 = vpop.eup %1484  ;;  %v1125_v1 = vadd.f32 1e-05, %v1061_v2  ;;  %v998_v19 = vmul.f32 0.0078125, %v930_v56  ;;  %v967_v61 = vmul.f32 0.0078125, %v836_v9 }
 0x30c   :  { %v1186_v53 = vmul.f32 %v1485_v29, %v1090_v14 }
 0x30d   :  { %1490 = vrsqrt.f32 %v1125_v1  ;;  %v1062_v51 = vsub.f32 %v998_v19, %v1030_v36  ;;  %v1031_v47 = vmul.f32 %v967_v61, %v967_v61  ;;  %v1095_v48 = vsub.f32 %v1953_v5, %v967_v61 }
 0x30e   :  { %1218 = vst [vmem:[#allocation8 + $0xb8] sm:$0xff] %v1186_v53  ;;  %v838_v28 = vpop.xlane.xlu1 %837  ;;  %v932_v32 = vpop.xlane.xlu0 %931 }
 0x30f   :  { %v1487_v34 = vpop.eup %1486  ;;  %v1126_v8 = vadd.f32 1e-05, %v1062_v51  ;;  %v968_v60 = vmul.f32 0.0078125, %v838_v28  ;;  %v999_v58 = vmul.f32 0.0078125, %v932_v32 }
 0x310   :  { %v1187_v59 = vmul.f32 %v1487_v34, %v1091_v55 }
 0x311   :  { %1492 = vrsqrt.f32 %v1126_v8  ;;  %v1063_v45 = vsub.f32 %v999_v58, %v1031_v47  ;;  %v1032_v39 = vmul.f32 %v968_v60, %v968_v60  ;;  %v1096_v42 = vsub.f32 %v1959_v10, %v968_v60 }
 0x312   :  { %1219 = vst [vmem:[#allocation8 + $0xc0] sm:$0xff] %v1187_v59  ;;  %v934_v22 = vpop.xlane.xlu1 %933  ;;  %v840_v44 = vpop.xlane.xlu0 %839 }
 0x313   :  { %v1489_v62 = vpop.eup %1488  ;;  %v1127_v49 = vadd.f32 1e-05, %v1063_v45  ;;  %v1000_v0 = vmul.f32 0.0078125, %v934_v22  ;;  %v969_v27 = vmul.f32 0.0078125, %v840_v44 }
 0x314   :  { %v1188_v24 = vmul.f32 %v1489_v62, %v1092_v46 }
 0x315   :  { %1494 = vrsqrt.f32 %v1127_v49  ;;  %v1064_v50 = vsub.f32 %v1000_v0, %v1032_v39  ;;  %v1033_v30 = vmul.f32 %v969_v27, %v969_v27  ;;  %v1097_v16 = vsub.f32 %v1965_v23, %v969_v27 }
 0x316   :  { %1220 = vst [vmem:[#allocation8 + $0xc8] sm:$0xff] %v1188_v24  ;;  %v842_v54 = vpop.xlane.xlu1 %841  ;;  %v936_v18 = vpop.xlane.xlu0 %935 }
 0x317   :  { %v1491_v33 = vpop.eup %1490  ;;  %v1128_v20 = vadd.f32 1e-05, %v1064_v50  ;;  %v970_v63 = vmul.f32 0.0078125, %v842_v54  ;;  %v1001_v17 = vmul.f32 0.0078125, %v936_v18 }
 0x318   :  { %v1189_v41 = vmul.f32 %v1491_v33, %v1093_v15 }
 0x319   :  { %1496 = vrsqrt.f32 %v1128_v20  ;;  %v1065_v21 = vsub.f32 %v1001_v17, %v1033_v30  ;;  %v1034_v26 = vmul.f32 %v970_v63, %v970_v63  ;;  %v1098_v31 = vsub.f32 %v1971_v13, %v970_v63 }
 0x31a   :  { %1221 = vst [vmem:[#allocation8 + $0xd0] sm:$0xff] %v1189_v41  ;;  %v938_v11 = vpop.xlane.xlu1 %937 }
 0x31b   :  { %v1493_v3 = vpop.eup %1492  ;;  %v1129_v37 = vadd.f32 1e-05, %v1065_v21  ;;  %v1002_v12 = vmul.f32 0.0078125, %v938_v11 }
 0x31c   :  { %v1190_v43 = vmul.f32 %v1493_v3, %v1094_v25 }
 0x31d   :  { %1498 = vrsqrt.f32 %v1129_v37  ;;  %v1066_v52 = vsub.f32 %v1002_v12, %v1034_v26 }
 0x31e   :  { %1222 = vst [vmem:[#allocation8 + $0xd8] sm:$0xff] %v1190_v43 }
 0x31f   :  { %v1495_v6 = vpop.eup %1494  ;;  %v1130_v40 = vadd.f32 1e-05, %v1066_v52 }
 0x320   :  { %v1191_v4 = vmul.f32 %v1495_v6, %v1095_v48 }
 0x321   :  { %1500 = vrsqrt.f32 %v1130_v40 }
 0x322   :  { %1223 = vst [vmem:[#allocation8 + $0xe0] sm:$0xff] %v1191_v4 }
 0x323   :  { %v1497_v7 = vpop.eup %1496 }
 0x324   :  { %v1192_v57 = vmul.f32 %v1497_v7, %v1096_v42 }
 0x326   :  { %1224 = vst [vmem:[#allocation8 + $0xe8] sm:$0xff] %v1192_v57 }
 0x327   :  { %v1499_v38 = vpop.eup %1498 }
 0x328   :  { %v1193_v35 = vmul.f32 %v1499_v38, %v1097_v16 }
 0x32a   :  { %1225 = vst [vmem:[#allocation8 + $0xf0] sm:$0xff] %v1193_v35 }
 0x32b   :  { %v1501_v5 = vpop.eup %1500 }
 0x32c   :  { %v1194_v2 = vmul.f32 %v1501_v5, %v1098_v31 }
 0x32e   :  { %1226 = vst [vmem:[#allocation8 + $0xf8] sm:$0xff] %v1194_v2 }
 0x32f   :  { %1579 = shalt.err (!%p1576_p0)
}
 0x330   :  { %s1580_s29 = scalar_lea.hbm %s2088_s3, 4096 }
 0x331   :  { %p1581_p1 = scmp.ne.s32.totalorder %s2088_s3, %s1580_s29  ;;  %p1584_p2 = scmp.lt.u32.totalorder %s1580_s29, %s2088_s3 }
 0x333   :  { %p1586_p3 = pnand %p1584_p2, %p1581_p1 }
 0x335   :  { %1589 = shalt.err (!%p1586_p3)
}
 0x336   :  { %1238 = dma.vmem_to_hbm [thread:$0]  %s1233_s23, 4096, %s2088_s3, [#allocation4], %s1598_s24, %s1598_s24, %s1599_s25  }
 0x337   :  { %1594 = dma.done.wait [#allocation4], 4096  }
 0x338   :  { %1595 = vsyncadd [#allocation4], 4294963200 }
 0x339   :  { %1242 = vsyncpa [#allocation3], 1 }
 0x33a   :  { %1243 = vsyncpa [#allocation6], 1 }
 0x33b   :  { %1244 = vsyncpa [#allocation4], 1 }

</bundles_post_ra>
